<compile_context>
chip_gen: v7x
topology: tpu7x:2x2x1
jax: 0.10.0
libtpu: 0.0.40
codegen_flags: <defaults>
</compile_context>

<pallas_src>
import math

import numpy as np
import jax
import jax.numpy as jnp
from jax.experimental import pallas as pl
from jax.experimental.pallas import tpu as pltpu  # noqa: F401  (TPU backend registration / future use)

LANES = 128


# ----------------------------------------------------------------------------
# Clenshaw-Curtis quadrature weights (exact replica of UMNN's compute_cc_weights)
# ----------------------------------------------------------------------------
def compute_cc_weights(nb_steps):
    lam = np.arange(0, nb_steps + 1, 1).reshape(-1, 1)
    lam = np.cos((lam @ lam.T) * math.pi / nb_steps)
    lam[:, 0] = 0.5
    lam[:, -1] = 0.5 * lam[:, -1]
    lam = lam * 2.0 / nb_steps
    W = np.arange(0, nb_steps + 1, 1).reshape(-1, 1)
    W[np.arange(1, nb_steps + 1, 2)] = 0
    W = 2.0 / (1 - W ** 2)
    W[0] = 1
    W[np.arange(1, nb_steps + 1, 2)] = 0
    cc_weights = (lam.T @ W).flatten()                       # (nb_steps+1,)
    steps = np.cos(
        np.arange(0, nb_steps + 1, 1).reshape(-1, 1) * math.pi / nb_steps
    ).flatten()                                              # (nb_steps+1,)
    return cc_weights, steps


# ----------------------------------------------------------------------------
# Parameter packing: one (rows, 128) f32 slab, 8-row-aligned slots, zero lane padding.
# ----------------------------------------------------------------------------
def build_slab(pieces):
    """pieces: list of (name, 2-D np array with cols <= 128).
       Returns (slab jnp (R,128), layout dict name -> (row_offset, real_rows))."""
    layout = {}
    blocks = []
    offset = 0
    for name, arr in pieces:
        arr = np.asarray(arr, np.float32)
        r, c = arr.shape
        assert c <= LANES, f"{name}: {c} lanes > {LANES}"
        slot = int(-(-r // 8) * 8)                 # round up to sublane multiple
        blk = np.zeros((slot, LANES), np.float32)
        blk[:r, :c] = arr
        blocks.append(blk)
        layout[name] = (offset, r)
        offset += slot
    slab = np.concatenate(blocks, axis=0)
    return jnp.asarray(slab), layout


def pack_pieces(emb_params, iparams, cparams):
    """Pack embedding MLP + UMNN (integrand & conditioner fused) weights into slab pieces."""
    emb_np = [np.asarray(p, np.float32) for p in emb_params]
    iw1, ib1, iw2, ib2, iw3, ib3, iw4, ib4 = [np.asarray(p, np.float32) for p in iparams]
    cw1, cb1, cw2, cb2, cw3, cb3, cw4, cb4 = [np.asarray(p, np.float32) for p in cparams]
    D, _, Hm = iw2.shape
    DH = D * Hm
    C = cw1.shape[1]
    assert 2 * DH <= LANES, "fused integrand+conditioner width must fit one lane group"
    for j in range(len(emb_np) // 2):
        assert emb_np[2 * j].shape[1] <= LANES

    def blockdiag(ws):                       # (D, a, b) -> (D*a, D*b)
        Dd, a, b = ws.shape
        out = np.zeros((Dd * a, Dd * b), np.float32)
        for d in range(Dd):
            out[d * a:(d + 1) * a, d * b:(d + 1) * b] = ws[d]
        return out

    def concat_cols(ws):                     # (D, a, b) -> (a, D*b)
        return np.concatenate(list(ws), axis=1)

    def flat_bias(bs):                       # (D, 1, b) -> (1, D*b)
        return bs.reshape(1, -1)

    def pad_rows(w, rows):                   # zero-pad K dim up to the padded activation width
        out = np.zeros((rows, w.shape[1]), np.float32)
        out[:w.shape[0]] = w
        return out

    # layer 1 (fused): lanes [0, DH) integrand (gets s_k * x@wt), lanes [DH, 2DH) conditioner
    w1h = concat_cols(iw1[:, 1:, :])                                   # (C, DH)
    c1 = concat_cols(cw1)                                              # (C, DH)
    W1hc = np.concatenate([w1h, c1], axis=1)                           # (C, 2DH)
    b1c = np.concatenate([flat_bias(ib1), flat_bias(cb1)], axis=1)     # (1, 2DH)
    Wt = blockdiag(iw1[:, 0:1, :])                                     # (D, DH); lanes >=DH stay 0

    def fuse_hidden(wi, ci, bi, cbi):
        W = np.zeros((2 * DH, 2 * DH), np.float32)
        W[:DH, :DH] = blockdiag(wi)
        W[DH:2 * DH, DH:2 * DH] = blockdiag(ci)
        b = np.concatenate([flat_bias(bi), flat_bias(cbi)], axis=1)
        return W, b

    W2f, b2f = fuse_hidden(iw2, cw2, ib2, cb2)
    W3f, b3f = fuse_hidden(iw3, cw3, ib3, cb3)

    # merged output head: cols [0,D)=integrand f, [D,2D)=offset, [2D,3D)=log-scale
    W4f = np.zeros((2 * DH, 3 * D), np.float32)
    W4f[:DH, 0:D] = blockdiag(iw4)
    W4f[DH:2 * DH, D:2 * D] = blockdiag(cw4[:, :, 0:1])
    W4f[DH:2 * DH, 2 * D:3 * D] = blockdiag(cw4[:, :, 1:2])
    b4f = np.concatenate([ib4.reshape(1, D),
                          cb4[:, :, 0].reshape(1, D),
                          cb4[:, :, 1].reshape(1, D)], axis=1)          # (1, 3D)

    pieces = [("We1", emb_np[0]), ("be1", emb_np[1])]
    n_emb = len(emb_np) // 2
    for j in range(1, n_emb):
        # activations of layers >=2 live in zero-padded 128-lane vregs -> pad weight K to 128
        pieces += [(f"We{j + 1}", pad_rows(emb_np[2 * j], LANES)),
                   (f"be{j + 1}", emb_np[2 * j + 1])]
    pieces += [
        ("W1hc", pad_rows(W1hc, LANES)), ("b1c", b1c),
        ("Wt", Wt),
        ("W2f", W2f), ("b2f", b2f),
        ("W3f", W3f), ("b3f", b3f),
        ("W4f", W4f), ("b4f", b4f),
    ]
    return pieces, n_emb


# ----------------------------------------------------------------------------
# Fused kernel: embedding MLP + UMNN (integrand & conditioner fused, all dims + all
# quadrature points batched into sublanes) + sigmoid.  Single invocation, no grid.
# ----------------------------------------------------------------------------
def make_kernel(layout, n_emb, T, B, D, s_vals, cc_half):
    def kernel(x_ref, slab_ref, out_ref):
        def piece(name):
            off, rows = layout[name]
            return slab_ref[pl.ds(off, rows), :]        # static, 8-row-aligned slice (free)

        x = x_ref[...]                                  # (B, D)

        # --- 1) embedding MLP: ReLU after EVERY linear (incl. the last), as in the module ---
        a = x
        for j in range(n_emb):
            w = piece(f"We{j + 1}")
            b = piece(f"be{j + 1}")
            a = jnp.maximum(jnp.dot(a, w, preferred_element_type=jnp.float32) + b, 0.0)
        h = a                                           # (B, 128): real lanes [0, out_emb), rest 0

        # --- 2) fused integrand+conditioner layer 1 at M=B, then s_k*(x@wt) identity ---
        hwc = jnp.dot(h, piece("W1hc"), preferred_element_type=jnp.float32) + piece("b1c")
        xw = jnp.dot(x, piece("Wt"), preferred_element_type=jnp.float32)   # conditioner lanes = 0
        # (T*B, 128): rows k*B+b; integrand lanes scaled by s_k, conditioner lanes k-invariant
        a0 = jnp.concatenate(
            [jnp.maximum(hwc + s_vals[k] * xw, 0.0) for k in range(T)], axis=0)

        # --- 3) fused hidden layers + merged output head (full 128-lane operands) ---
        a1 = jnp.maximum(
            jnp.dot(a0, piece("W2f"), preferred_element_type=jnp.float32) + piece("b2f"), 0.0)
        a2 = jnp.maximum(
            jnp.dot(a1, piece("W3f"), preferred_element_type=jnp.float32) + piece("b3f"), 0.0)
        head = jnp.dot(a2, piece("W4f"), preferred_element_type=jnp.float32) + piece("b4f")

        # integrand: ELU + 1 (positive); clamp exp arg so the dead branch can't produce inf
        f = head[:, 0:D]                                                     # (T*B, D)
        f = jnp.where(f > 0.0, f, jnp.exp(jnp.minimum(f, 0.0)) - 1.0) + 1.0

        # --- 4) CC-weighted reduction over T as 11 VPU multiply-adds (0.5 folded in) ---
        quad = cc_half[0] * f[0:B, :]
        for k in range(1, T):
            quad = quad + cc_half[k] * f[k * B:(k + 1) * B, :]
        integral = quad * x                                                  # (B, D)

        # conditioner outputs are k-invariant -> read them from the first B rows
        offset = head[0:B, D:2 * D]
        logscale = head[0:B, 2 * D:3 * D]

        # --- 5) sum over the D monotone dims + sigmoid ---
        z = jnp.sum(jnp.exp(logscale) * integral + offset, axis=1, keepdims=True)   # (B, 1)
        out_ref[...] = 1.0 / (1.0 + jnp.exp(-z))

    return kernel


def embedding_net_forward(x, slab, layout, n_emb, nb_steps):
    B, D = x.shape
    T = nb_steps + 1
    cc_w, cc_steps = compute_cc_weights(nb_steps)
    s_vals = [float((cc_steps[k] + 1.0) * 0.5) for k in range(T)]
    cc_half = [float(cc_w[k] * 0.5) for k in range(T)]

    kernel = make_kernel(layout, n_emb, T, B, D, s_vals, cc_half)

    flops = 2 * (B * D * LANES                       # We1
                 + (n_emb - 1) * B * LANES * LANES   # We2..WeN
                 + B * LANES * LANES                 # W1hc
                 + B * D * LANES                     # Wt
                 + 3 * T * B * LANES * LANES)        # W2f, W3f, W4f
    transcendentals = T * B * D + 2 * B * D + B      # ELU exps + exp(logscale) + sigmoid
    bytes_accessed = int(slab.size * 4 + x.size * 4 + B * 4)

    return pl.pallas_call(
        kernel,
        out_shape=jax.ShapeDtypeStruct((B, 1), jnp.float32),
        cost_estimate=pl.CostEstimate(flops=int(flops),
                                      transcendentals=int(transcendentals),
                                      bytes_accessed=bytes_accessed),
    )(x, slab)


# ----------------------------------------------------------------------------
# Pure-JAX reference (per-dim / per-quadrature-point), for correctness checking
# ----------------------------------------------------------------------------
def reference_forward(x, emb_params, iparams, cparams, nb_steps):
    cc_w, cc_steps = compute_cc_weights(nb_steps)
    a = x
    for i in range(len(emb_params) // 2):
        a = jnp.maximum(a @ emb_params[2 * i] + emb_params[2 * i + 1], 0.0)
    h = a
    iw1, ib1, iw2, ib2, iw3, ib3, iw4, ib4 = iparams
    cw1, cb1, cw2, cb2, cw3, cb3, cw4, cb4 = cparams
    D = x.shape[1]
    z = jnp.zeros((x.shape[0], 1), jnp.float32)
    for d in range(D):
        xd = x[:, d:d + 1]
        quad = jnp.zeros_like(xd)
        for k in range(nb_steps + 1):
            t = xd * float((cc_steps[k] + 1.0) * 0.5)
            inp = jnp.concatenate([t, h], axis=1)
            u = jnp.maximum(inp @ iw1[d] + ib1[d], 0.0)
            u = jnp.maximum(u @ iw2[d] + ib2[d], 0.0)
            u = jnp.maximum(u @ iw3[d] + ib3[d], 0.0)
            f = u @ iw4[d] + ib4[d]
            f = jnp.where(f > 0.0, f, jnp.exp(jnp.minimum(f, 0.0)) - 1.0) + 1.0
            quad = quad + float(cc_w[k]) * f
        integral = quad * xd * 0.5
        c = jnp.maximum(h @ cw1[d] + cb1[d], 0.0)
        c = jnp.maximum(c @ cw2[d] + cb2[d], 0.0)
        c = jnp.maximum(c @ cw3[d] + cb3[d], 0.0)
        c = c @ cw4[d] + cb4[d]
        z = z + jnp.exp(c[:, 1:2]) * integral + c[:, 0:1]
    return 1.0 / (1.0 + jnp.exp(-z))


# ----------------------------------------------------------------------------
# Deterministic parameter construction (PyTorch nn.Linear-style uniform init)
# ----------------------------------------------------------------------------
def init_linear(key, fan_in, fan_out):
    kw, kb = jax.random.split(key)
    bound = 1.0 / np.sqrt(fan_in)
    w = jax.random.uniform(kw, (fan_in, fan_out), jnp.float32, -bound, bound)
    b = jax.random.uniform(kb, (1, fan_out), jnp.float32, -bound, bound)
    return w, b


def init_mlp(key, dims):
    params = []
    keys = jax.random.split(key, len(dims) - 1)
    for k, (din, dout) in zip(keys, zip(dims[:-1], dims[1:])):
        w, b = init_linear(k, din, dout)
        params += [w, b]
    return params


if __name__ == "__main__":
    # Small shapes consistent with the module's constructor signature.
    B = 8                      # batch
    in_embedding = in_main = 4 # x has dim 4; fed to both embedding_net and umnn
    out_embedding = 8
    num_embedding_layers = 3
    num_embedding_hiddens = 32
    num_main_hidden_layers = 3
    num_main_hidden_nodes = 16     # D * Hm = 64 -> integrand|conditioner fusion fills 128 lanes
    nb_steps = 10

    root = jax.random.PRNGKey(0)
    k_x, k_emb, k_umnn = jax.random.split(root, 3)

    # embedding_net: Linear(in,H) ReLU, 3x[Linear(H,H) ReLU], Linear(H,out) ReLU
    emb_dims = ([in_embedding]
                + [num_embedding_hiddens] * (num_embedding_layers + 1)
                + [out_embedding])
    emb_params = init_mlp(k_emb, emb_dims)

    # SlowDMonotonicNN: per input dimension, an integrand MLP and a conditioner MLP.
    Hm = num_main_hidden_nodes
    int_dims = [1 + out_embedding] + [Hm] * num_main_hidden_layers + [1]
    cond_dims = [out_embedding] + [Hm] * num_main_hidden_layers + [2]

    per_dim_int, per_dim_cond = [], []
    for dk in jax.random.split(k_umnn, in_main):
        ki, kc = jax.random.split(dk)
        per_dim_int.append(init_mlp(ki, int_dims))
        per_dim_cond.append(init_mlp(kc, cond_dims))

    # stack each parameter across the D input dimensions -> (D, in, out) / (D, 1, out)
    iparams = [jnp.stack([p[j] for p in per_dim_int], axis=0)
               for j in range(len(per_dim_int[0]))]
    cparams = [jnp.stack([p[j] for p in per_dim_cond], axis=0)
               for j in range(len(per_dim_cond[0]))]

    # one-time packing: ALL parameters into a single lane-dense (rows, 128) f32 slab
    pieces, n_emb = pack_pieces(emb_params, iparams, cparams)
    slab, layout = build_slab(pieces)

    x = jax.random.normal(k_x, (B, in_main), dtype=jnp.float32)

    y = embedding_net_forward(x, slab, layout, n_emb, nb_steps)
    y = jax.block_until_ready(y)

    assert y.shape == (B, 1)
    assert bool(jnp.all(jnp.isfinite(y)))
    assert bool(jnp.all((y > 0.0) & (y < 1.0)))   # sigmoid output range

    # numerical check against the per-dim / per-step pure-JAX reference
    y_ref = reference_forward(x, emb_params, iparams, cparams, nb_steps)
    assert bool(jnp.max(jnp.abs(y - y_ref)) < 2e-4)

    print("KERNEL_OK")
</pallas_src>

<mosaic_0001>
module attributes {stable_mosaic.version = 11 : i64} {
  func.func @kernel(%arg0: memref<8x4xf32, #tpu.memory_space<vmem>>, %arg1: memref<1112x128xf32, #tpu.memory_space<vmem>>, %arg2: memref<8x1xf32, #tpu.memory_space<vmem>>) attributes {dimension_semantics = [], scalar_prefetch = 0 : i64, scratch_operands = 0 : i64, tpu.core_type = #tpu.core_type<tc>} {
    %c0 = arith.constant 0 : index
    %c0_0 = arith.constant 0 : index
    %0 = vector.load %arg0[%c0, %c0_0] : memref<8x4xf32, #tpu.memory_space<vmem>>, vector<8x4xf32>
    %c0_1 = arith.constant 0 : index
    %c0_2 = arith.constant 0 : index
    %1 = vector.load %arg1[%c0_1, %c0_2] : memref<1112x128xf32, #tpu.memory_space<vmem>>, vector<4x128xf32>
    %c8 = arith.constant 8 : index
    %c0_3 = arith.constant 0 : index
    %2 = vector.load %arg1[%c8, %c0_3] : memref<1112x128xf32, #tpu.memory_space<vmem>>, vector<1x128xf32>
    %cst = arith.constant dense<0.000000e+00> : vector<8x128xf32>
    %3 = tpu.matmul %0, %1, %cst {dimension_numbers = #tpu.dot_dimension_numbers<[1], [0], [0], [1], [0, 0, 1, 1], [], []>} : vector<8x4xf32>, vector<4x128xf32>, vector<8x128xf32> -> vector<8x128xf32>
    %4 = vector.broadcast %2 : vector<1x128xf32> to vector<8x128xf32>
    %5 = arith.addf %3, %4 : vector<8x128xf32>
    %cst_4 = arith.constant 0.000000e+00 : f32
    %6 = vector.broadcast %cst_4 : f32 to vector<8x128xf32>
    %7 = arith.maximumf %5, %6 : vector<8x128xf32>
    %c16 = arith.constant 16 : index
    %c0_5 = arith.constant 0 : index
    %8 = vector.load %arg1[%c16, %c0_5] : memref<1112x128xf32, #tpu.memory_space<vmem>>, vector<128x128xf32>
    %c144 = arith.constant 144 : index
    %c0_6 = arith.constant 0 : index
    %9 = vector.load %arg1[%c144, %c0_6] : memref<1112x128xf32, #tpu.memory_space<vmem>>, vector<1x128xf32>
    %cst_7 = arith.constant dense<0.000000e+00> : vector<8x128xf32>
    %10 = tpu.matmul %7, %8, %cst_7 {dimension_numbers = #tpu.dot_dimension_numbers<[1], [0], [0], [1], [0, 0, 1, 1], [], []>} : vector<8x128xf32>, vector<128x128xf32>, vector<8x128xf32> -> vector<8x128xf32>
    %11 = vector.broadcast %9 : vector<1x128xf32> to vector<8x128xf32>
    %12 = arith.addf %10, %11 : vector<8x128xf32>
    %cst_8 = arith.constant 0.000000e+00 : f32
    %13 = vector.broadcast %cst_8 : f32 to vector<8x128xf32>
    %14 = arith.maximumf %12, %13 : vector<8x128xf32>
    %c152 = arith.constant 152 : index
    %c0_9 = arith.constant 0 : index
    %15 = vector.load %arg1[%c152, %c0_9] : memref<1112x128xf32, #tpu.memory_space<vmem>>, vector<128x128xf32>
    %c280 = arith.constant 280 : index
    %c0_10 = arith.constant 0 : index
    %16 = vector.load %arg1[%c280, %c0_10] : memref<1112x128xf32, #tpu.memory_space<vmem>>, vector<1x128xf32>
    %cst_11 = arith.constant dense<0.000000e+00> : vector<8x128xf32>
    %17 = tpu.matmul %14, %15, %cst_11 {dimension_numbers = #tpu.dot_dimension_numbers<[1], [0], [0], [1], [0, 0, 1, 1], [], []>} : vector<8x128xf32>, vector<128x128xf32>, vector<8x128xf32> -> vector<8x128xf32>
    %18 = vector.broadcast %16 : vector<1x128xf32> to vector<8x128xf32>
    %19 = arith.addf %17, %18 : vector<8x128xf32>
    %cst_12 = arith.constant 0.000000e+00 : f32
    %20 = vector.broadcast %cst_12 : f32 to vector<8x128xf32>
    %21 = arith.maximumf %19, %20 : vector<8x128xf32>
    %c288 = arith.constant 288 : index
    %c0_13 = arith.constant 0 : index
    %22 = vector.load %arg1[%c288, %c0_13] : memref<1112x128xf32, #tpu.memory_space<vmem>>, vector<128x128xf32>
    %c416 = arith.constant 416 : index
    %c0_14 = arith.constant 0 : index
    %23 = vector.load %arg1[%c416, %c0_14] : memref<1112x128xf32, #tpu.memory_space<vmem>>, vector<1x128xf32>
    %cst_15 = arith.constant dense<0.000000e+00> : vector<8x128xf32>
    %24 = tpu.matmul %21, %22, %cst_15 {dimension_numbers = #tpu.dot_dimension_numbers<[1], [0], [0], [1], [0, 0, 1, 1], [], []>} : vector<8x128xf32>, vector<128x128xf32>, vector<8x128xf32> -> vector<8x128xf32>
    %25 = vector.broadcast %23 : vector<1x128xf32> to vector<8x128xf32>
    %26 = arith.addf %24, %25 : vector<8x128xf32>
    %cst_16 = arith.constant 0.000000e+00 : f32
    %27 = vector.broadcast %cst_16 : f32 to vector<8x128xf32>
    %28 = arith.maximumf %26, %27 : vector<8x128xf32>
    %c424 = arith.constant 424 : index
    %c0_17 = arith.constant 0 : index
    %29 = vector.load %arg1[%c424, %c0_17] : memref<1112x128xf32, #tpu.memory_space<vmem>>, vector<128x128xf32>
    %c552 = arith.constant 552 : index
    %c0_18 = arith.constant 0 : index
    %30 = vector.load %arg1[%c552, %c0_18] : memref<1112x128xf32, #tpu.memory_space<vmem>>, vector<1x128xf32>
    %cst_19 = arith.constant dense<0.000000e+00> : vector<8x128xf32>
    %31 = tpu.matmul %28, %29, %cst_19 {dimension_numbers = #tpu.dot_dimension_numbers<[1], [0], [0], [1], [0, 0, 1, 1], [], []>} : vector<8x128xf32>, vector<128x128xf32>, vector<8x128xf32> -> vector<8x128xf32>
    %32 = vector.broadcast %30 : vector<1x128xf32> to vector<8x128xf32>
    %33 = arith.addf %31, %32 : vector<8x128xf32>
    %cst_20 = arith.constant 0.000000e+00 : f32
    %34 = vector.broadcast %cst_20 : f32 to vector<8x128xf32>
    %35 = arith.maximumf %33, %34 : vector<8x128xf32>
    %c560 = arith.constant 560 : index
    %c0_21 = arith.constant 0 : index
    %36 = vector.load %arg1[%c560, %c0_21] : memref<1112x128xf32, #tpu.memory_space<vmem>>, vector<128x128xf32>
    %cst_22 = arith.constant dense<0.000000e+00> : vector<8x128xf32>
    %37 = tpu.matmul %35, %36, %cst_22 {dimension_numbers = #tpu.dot_dimension_numbers<[1], [0], [0], [1], [0, 0, 1, 1], [], []>} : vector<8x128xf32>, vector<128x128xf32>, vector<8x128xf32> -> vector<8x128xf32>
    %c688 = arith.constant 688 : index
    %c0_23 = arith.constant 0 : index
    %38 = vector.load %arg1[%c688, %c0_23] : memref<1112x128xf32, #tpu.memory_space<vmem>>, vector<1x128xf32>
    %39 = vector.broadcast %38 : vector<1x128xf32> to vector<8x128xf32>
    %40 = arith.addf %37, %39 : vector<8x128xf32>
    %c696 = arith.constant 696 : index
    %c0_24 = arith.constant 0 : index
    %41 = vector.load %arg1[%c696, %c0_24] : memref<1112x128xf32, #tpu.memory_space<vmem>>, vector<4x128xf32>
    %cst_25 = arith.constant dense<0.000000e+00> : vector<8x128xf32>
    %42 = tpu.matmul %0, %41, %cst_25 {dimension_numbers = #tpu.dot_dimension_numbers<[1], [0], [0], [1], [0, 0, 1, 1], [], []>} : vector<8x4xf32>, vector<4x128xf32>, vector<8x128xf32> -> vector<8x128xf32>
    %cst_26 = arith.constant 1.000000e+00 : f32
    %43 = vector.broadcast %cst_26 : f32 to vector<8x128xf32>
    %44 = arith.mulf %43, %42 : vector<8x128xf32>
    %45 = arith.addf %40, %44 : vector<8x128xf32>
    %cst_27 = arith.constant 0.000000e+00 : f32
    %46 = vector.broadcast %cst_27 : f32 to vector<8x128xf32>
    %47 = arith.maximumf %45, %46 : vector<8x128xf32>
    %cst_28 = arith.constant 0.97552824 : f32
    %48 = vector.broadcast %cst_28 : f32 to vector<8x128xf32>
    %49 = arith.mulf %48, %42 : vector<8x128xf32>
    %50 = arith.addf %40, %49 : vector<8x128xf32>
    %cst_29 = arith.constant 0.000000e+00 : f32
    %51 = vector.broadcast %cst_29 : f32 to vector<8x128xf32>
    %52 = arith.maximumf %50, %51 : vector<8x128xf32>
    %cst_30 = arith.constant 0.904508471 : f32
    %53 = vector.broadcast %cst_30 : f32 to vector<8x128xf32>
    %54 = arith.mulf %53, %42 : vector<8x128xf32>
    %55 = arith.addf %40, %54 : vector<8x128xf32>
    %cst_31 = arith.constant 0.000000e+00 : f32
    %56 = vector.broadcast %cst_31 : f32 to vector<8x128xf32>
    %57 = arith.maximumf %55, %56 : vector<8x128xf32>
    %cst_32 = arith.constant 0.793892622 : f32
    %58 = vector.broadcast %cst_32 : f32 to vector<8x128xf32>
    %59 = arith.mulf %58, %42 : vector<8x128xf32>
    %60 = arith.addf %40, %59 : vector<8x128xf32>
    %cst_33 = arith.constant 0.000000e+00 : f32
    %61 = vector.broadcast %cst_33 : f32 to vector<8x128xf32>
    %62 = arith.maximumf %60, %61 : vector<8x128xf32>
    %cst_34 = arith.constant 0.654508471 : f32
    %63 = vector.broadcast %cst_34 : f32 to vector<8x128xf32>
    %64 = arith.mulf %63, %42 : vector<8x128xf32>
    %65 = arith.addf %40, %64 : vector<8x128xf32>
    %cst_35 = arith.constant 0.000000e+00 : f32
    %66 = vector.broadcast %cst_35 : f32 to vector<8x128xf32>
    %67 = arith.maximumf %65, %66 : vector<8x128xf32>
    %cst_36 = arith.constant 5.000000e-01 : f32
    %68 = vector.broadcast %cst_36 : f32 to vector<8x128xf32>
    %69 = arith.mulf %68, %42 : vector<8x128xf32>
    %70 = arith.addf %40, %69 : vector<8x128xf32>
    %cst_37 = arith.constant 0.000000e+00 : f32
    %71 = vector.broadcast %cst_37 : f32 to vector<8x128xf32>
    %72 = arith.maximumf %70, %71 : vector<8x128xf32>
    %cst_38 = arith.constant 0.345491499 : f32
    %73 = vector.broadcast %cst_38 : f32 to vector<8x128xf32>
    %74 = arith.mulf %73, %42 : vector<8x128xf32>
    %75 = arith.addf %40, %74 : vector<8x128xf32>
    %cst_39 = arith.constant 0.000000e+00 : f32
    %76 = vector.broadcast %cst_39 : f32 to vector<8x128xf32>
    %77 = arith.maximumf %75, %76 : vector<8x128xf32>
    %cst_40 = arith.constant 0.206107378 : f32
    %78 = vector.broadcast %cst_40 : f32 to vector<8x128xf32>
    %79 = arith.mulf %78, %42 : vector<8x128xf32>
    %80 = arith.addf %40, %79 : vector<8x128xf32>
    %cst_41 = arith.constant 0.000000e+00 : f32
    %81 = vector.broadcast %cst_41 : f32 to vector<8x128xf32>
    %82 = arith.maximumf %80, %81 : vector<8x128xf32>
    %cst_42 = arith.constant 0.0954915061 : f32
    %83 = vector.broadcast %cst_42 : f32 to vector<8x128xf32>
    %84 = arith.mulf %83, %42 : vector<8x128xf32>
    %85 = arith.addf %40, %84 : vector<8x128xf32>
    %cst_43 = arith.constant 0.000000e+00 : f32
    %86 = vector.broadcast %cst_43 : f32 to vector<8x128xf32>
    %87 = arith.maximumf %85, %86 : vector<8x128xf32>
    %cst_44 = arith.constant 0.0244717412 : f32
    %88 = vector.broadcast %cst_44 : f32 to vector<8x128xf32>
    %89 = arith.mulf %88, %42 : vector<8x128xf32>
    %90 = arith.addf %40, %89 : vector<8x128xf32>
    %cst_45 = arith.constant 0.000000e+00 : f32
    %91 = vector.broadcast %cst_45 : f32 to vector<8x128xf32>
    %92 = arith.maximumf %90, %91 : vector<8x128xf32>
    %cst_46 = arith.constant 0.000000e+00 : f32
    %93 = vector.broadcast %cst_46 : f32 to vector<8x128xf32>
    %94 = arith.mulf %93, %42 : vector<8x128xf32>
    %95 = arith.addf %40, %94 : vector<8x128xf32>
    %cst_47 = arith.constant 0.000000e+00 : f32
    %96 = vector.broadcast %cst_47 : f32 to vector<8x128xf32>
    %97 = arith.maximumf %95, %96 : vector<8x128xf32>
    %98 = tpu.concatenate %47, %52, %57, %62, %67, %72, %77, %82, %87, %92, %97 in 0 : vector<8x128xf32>, vector<8x128xf32>, vector<8x128xf32>, vector<8x128xf32>, vector<8x128xf32>, vector<8x128xf32>, vector<8x128xf32>, vector<8x128xf32>, vector<8x128xf32>, vector<8x128xf32>, vector<8x128xf32> -> vector<88x128xf32>
    %c704 = arith.constant 704 : index
    %c0_48 = arith.constant 0 : index
    %99 = vector.load %arg1[%c704, %c0_48] : memref<1112x128xf32, #tpu.memory_space<vmem>>, vector<128x128xf32>
    %cst_49 = arith.constant dense<0.000000e+00> : vector<88x128xf32>
    %100 = tpu.matmul %98, %99, %cst_49 {dimension_numbers = #tpu.dot_dimension_numbers<[1], [0], [0], [1], [0, 0, 1, 1], [], []>} : vector<88x128xf32>, vector<128x128xf32>, vector<88x128xf32> -> vector<88x128xf32>
    %c832 = arith.constant 832 : index
    %c0_50 = arith.constant 0 : index
    %101 = vector.load %arg1[%c832, %c0_50] : memref<1112x128xf32, #tpu.memory_space<vmem>>, vector<1x128xf32>
    %102 = vector.broadcast %101 : vector<1x128xf32> to vector<88x128xf32>
    %103 = arith.addf %100, %102 : vector<88x128xf32>
    %cst_51 = arith.constant 0.000000e+00 : f32
    %104 = vector.broadcast %cst_51 : f32 to vector<88x128xf32>
    %105 = arith.maximumf %103, %104 : vector<88x128xf32>
    %c840 = arith.constant 840 : index
    %c0_52 = arith.constant 0 : index
    %106 = vector.load %arg1[%c840, %c0_52] : memref<1112x128xf32, #tpu.memory_space<vmem>>, vector<128x128xf32>
    %cst_53 = arith.constant dense<0.000000e+00> : vector<88x128xf32>
    %107 = tpu.matmul %105, %106, %cst_53 {dimension_numbers = #tpu.dot_dimension_numbers<[1], [0], [0], [1], [0, 0, 1, 1], [], []>} : vector<88x128xf32>, vector<128x128xf32>, vector<88x128xf32> -> vector<88x128xf32>
    %c968 = arith.constant 968 : index
    %c0_54 = arith.constant 0 : index
    %108 = vector.load %arg1[%c968, %c0_54] : memref<1112x128xf32, #tpu.memory_space<vmem>>, vector<1x128xf32>
    %109 = vector.broadcast %108 : vector<1x128xf32> to vector<88x128xf32>
    %110 = arith.addf %107, %109 : vector<88x128xf32>
    %cst_55 = arith.constant 0.000000e+00 : f32
    %111 = vector.broadcast %cst_55 : f32 to vector<88x128xf32>
    %112 = arith.maximumf %110, %111 : vector<88x128xf32>
    %c976 = arith.constant 976 : index
    %c0_56 = arith.constant 0 : index
    %113 = vector.load %arg1[%c976, %c0_56] : memref<1112x128xf32, #tpu.memory_space<vmem>>, vector<128x128xf32>
    %cst_57 = arith.constant dense<0.000000e+00> : vector<88x128xf32>
    %114 = tpu.matmul %112, %113, %cst_57 {dimension_numbers = #tpu.dot_dimension_numbers<[1], [0], [0], [1], [0, 0, 1, 1], [], []>} : vector<88x128xf32>, vector<128x128xf32>, vector<88x128xf32> -> vector<88x128xf32>
    %c1104 = arith.constant 1104 : index
    %c0_58 = arith.constant 0 : index
    %115 = vector.load %arg1[%c1104, %c0_58] : memref<1112x128xf32, #tpu.memory_space<vmem>>, vector<1x128xf32>
    %116 = vector.broadcast %115 : vector<1x128xf32> to vector<88x128xf32>
    %117 = arith.addf %114, %116 : vector<88x128xf32>
    %118 = vector.extract_strided_slice %117 {offsets = [0, 0], sizes = [88, 4], strides = [1, 1]} : vector<88x128xf32> to vector<88x4xf32>
    %cst_59 = arith.constant 0.000000e+00 : f32
    %119 = vector.broadcast %cst_59 : f32 to vector<88x4xf32>
    %120 = arith.cmpf ogt, %118, %119 : vector<88x4xf32>
    %cst_60 = arith.constant 0.000000e+00 : f32
    %121 = vector.broadcast %cst_60 : f32 to vector<88x4xf32>
    %122 = arith.minimumf %118, %121 : vector<88x4xf32>
    %123 = math.exp %122 : vector<88x4xf32>
    %cst_61 = arith.constant 1.000000e+00 : f32
    %124 = vector.broadcast %cst_61 : f32 to vector<88x4xf32>
    %125 = arith.subf %123, %124 : vector<88x4xf32>
    %126 = arith.select %120, %118, %125 : vector<88x4xi1>, vector<88x4xf32>
    %cst_62 = arith.constant 1.000000e+00 : f32
    %127 = vector.broadcast %cst_62 : f32 to vector<88x4xf32>
    %128 = arith.addf %126, %127 : vector<88x4xf32>
    %129 = vector.extract_strided_slice %128 {offsets = [0, 0], sizes = [8, 4], strides = [1, 1]} : vector<88x4xf32> to vector<8x4xf32>
    %cst_63 = arith.constant 0.0045454544 : f32
    %130 = vector.broadcast %cst_63 : f32 to vector<8x4xf32>
    %131 = arith.mulf %130, %129 : vector<8x4xf32>
    %132 = vector.extract_strided_slice %128 {offsets = [8, 0], sizes = [8, 4], strides = [1, 1]} : vector<88x4xf32> to vector<8x4xf32>
    %cst_64 = arith.constant 0.0482996292 : f32
    %133 = vector.broadcast %cst_64 : f32 to vector<8x4xf32>
    %134 = arith.mulf %133, %132 : vector<8x4xf32>
    %135 = arith.addf %131, %134 : vector<8x4xf32>
    %136 = vector.extract_strided_slice %128 {offsets = [16, 0], sizes = [8, 4], strides = [1, 1]} : vector<88x4xf32> to vector<8x4xf32>
    %cst_65 = arith.constant 0.0918075069 : f32
    %137 = vector.broadcast %cst_65 : f32 to vector<8x4xf32>
    %138 = arith.mulf %137, %136 : vector<8x4xf32>
    %139 = arith.addf %135, %138 : vector<8x4xf32>
    %140 = vector.extract_strided_slice %128 {offsets = [24, 0], sizes = [8, 4], strides = [1, 1]} : vector<88x4xf32> to vector<8x4xf32>
    %cst_66 = arith.constant 0.127804264 : f32
    %141 = vector.broadcast %cst_66 : f32 to vector<8x4xf32>
    %142 = arith.mulf %141, %140 : vector<8x4xf32>
    %143 = arith.addf %139, %142 : vector<8x4xf32>
    %144 = vector.extract_strided_slice %128 {offsets = [32, 0], sizes = [8, 4], strides = [1, 1]} : vector<88x4xf32> to vector<8x4xf32>
    %cst_67 = arith.constant 0.14859654 : f32
    %145 = vector.broadcast %cst_67 : f32 to vector<8x4xf32>
    %146 = arith.mulf %145, %144 : vector<8x4xf32>
    %147 = arith.addf %143, %146 : vector<8x4xf32>
    %148 = vector.extract_strided_slice %128 {offsets = [40, 0], sizes = [8, 4], strides = [1, 1]} : vector<88x4xf32> to vector<8x4xf32>
    %cst_68 = arith.constant 0.157893211 : f32
    %149 = vector.broadcast %cst_68 : f32 to vector<8x4xf32>
    %150 = arith.mulf %149, %148 : vector<8x4xf32>
    %151 = arith.addf %147, %150 : vector<8x4xf32>
    %152 = vector.extract_strided_slice %128 {offsets = [48, 0], sizes = [8, 4], strides = [1, 1]} : vector<88x4xf32> to vector<8x4xf32>
    %cst_69 = arith.constant 0.14859654 : f32
    %153 = vector.broadcast %cst_69 : f32 to vector<8x4xf32>
    %154 = arith.mulf %153, %152 : vector<8x4xf32>
    %155 = arith.addf %151, %154 : vector<8x4xf32>
    %156 = vector.extract_strided_slice %128 {offsets = [56, 0], sizes = [8, 4], strides = [1, 1]} : vector<88x4xf32> to vector<8x4xf32>
    %cst_70 = arith.constant 0.127804264 : f32
    %157 = vector.broadcast %cst_70 : f32 to vector<8x4xf32>
    %158 = arith.mulf %157, %156 : vector<8x4xf32>
    %159 = arith.addf %155, %158 : vector<8x4xf32>
    %160 = vector.extract_strided_slice %128 {offsets = [64, 0], sizes = [8, 4], strides = [1, 1]} : vector<88x4xf32> to vector<8x4xf32>
    %cst_71 = arith.constant 0.0918075069 : f32
    %161 = vector.broadcast %cst_71 : f32 to vector<8x4xf32>
    %162 = arith.mulf %161, %160 : vector<8x4xf32>
    %163 = arith.addf %159, %162 : vector<8x4xf32>
    %164 = vector.extract_strided_slice %128 {offsets = [72, 0], sizes = [8, 4], strides = [1, 1]} : vector<88x4xf32> to vector<8x4xf32>
    %cst_72 = arith.constant 0.0482996292 : f32
    %165 = vector.broadcast %cst_72 : f32 to vector<8x4xf32>
    %166 = arith.mulf %165, %164 : vector<8x4xf32>
    %167 = arith.addf %163, %166 : vector<8x4xf32>
    %168 = vector.extract_strided_slice %128 {offsets = [80, 0], sizes = [8, 4], strides = [1, 1]} : vector<88x4xf32> to vector<8x4xf32>
    %cst_73 = arith.constant 0.0045454544 : f32
    %169 = vector.broadcast %cst_73 : f32 to vector<8x4xf32>
    %170 = arith.mulf %169, %168 : vector<8x4xf32>
    %171 = arith.addf %167, %170 : vector<8x4xf32>
    %172 = arith.mulf %171, %0 : vector<8x4xf32>
    %173 = vector.extract_strided_slice %117 {offsets = [0, 4], sizes = [8, 4], strides = [1, 1]} : vector<88x128xf32> to vector<8x4xf32>
    %174 = vector.extract_strided_slice %117 {offsets = [0, 8], sizes = [8, 4], strides = [1, 1]} : vector<88x128xf32> to vector<8x4xf32>
    %175 = math.exp %174 : vector<8x4xf32>
    %176 = arith.mulf %175, %172 : vector<8x4xf32>
    %177 = arith.addf %176, %173 : vector<8x4xf32>
    %cst_74 = arith.constant dense<0.000000e+00> : vector<8xf32>
    %178 = vector.multi_reduction <add>, %177, %cst_74 [1] : vector<8x4xf32> to vector<8xf32>
    %179 = vector.shape_cast %178 : vector<8xf32> to vector<8x1xf32>
    %cst_75 = arith.constant 0.000000e+00 : f32
    %180 = vector.broadcast %cst_75 : f32 to vector<8x1xf32>
    %181 = arith.subf %180, %179 : vector<8x1xf32>
    %182 = math.exp %181 : vector<8x1xf32>
    %cst_76 = arith.constant 1.000000e+00 : f32
    %183 = vector.broadcast %cst_76 : f32 to vector<8x1xf32>
    %184 = arith.addf %183, %182 : vector<8x1xf32>
    %cst_77 = arith.constant 1.000000e+00 : f32
    %185 = vector.broadcast %cst_77 : f32 to vector<8x1xf32>
    %186 = arith.divf %185, %184 : vector<8x1xf32>
    %c0_78 = arith.constant 0 : index
    %c0_79 = arith.constant 0 : index
    %187 = vector.load %arg2[%c0_78, %c0_79] : memref<8x1xf32, #tpu.memory_space<vmem>>, vector<8x1xf32>
    tpu.vector_store %arg2[%c0_78, %c0_79], %186 {strides = array<i32>} : memref<8x1xf32, #tpu.memory_space<vmem>>, vector<8x1xf32>,
    return
  }
}

</mosaic_0001>

<bundles_post_ra>
// kernel: tpu_custom_call.1
= control target key start
LH: loop header
LB: loop body
LE: loop exit
PB: predicated region body
PF: predicated region fallthrough
CT: control target
= control target key end

     0   :  { %7 = vsyncpa [#allocation3], 0  ;;  %s2095_s9 = smov [#allocation2]   ;;  %s2337_s0 = inlined_call_operand.vmem [shape: f32[8,4], index: 0, kind: input, shape index: {}]   ;;  %s2338_s1 = inlined_call_operand.hbm [shape: f32[1112,128], index: 1, kind: input, shape index: {}]   ;;  %s2339_s2 = inlined_call_operand.vmem [shape: f32[8,1], index: 2, kind: output, shape index: {}]  }
   0x1   :  { %s15_s10 = sshll.u32 %s2095_s9, 4  ;;  %s2071_s13 = scalar_lea.hbm %s2338_s1, 17792  ;;  %s16_s10 = int_to_ptr.vmem [resolvable:$true] %s15_s10 }
   0x2   :  { %p2072_p0 = scmp.ne.s32.totalorder %s2338_s1, %s2071_s13  ;;  %p2075_p1 = scmp.lt.u32.totalorder %s2071_s13, %s2338_s1 }
   0x4   :  { %p2077_p2 = pnand %p2075_p1, %p2072_p0 }
   0x6   :  { %2080 = shalt.err (!%p2077_p2)
}
   0x7   :  { %s2081_s18 = scalar_lea.vmem %s16_s10, 17792  ;;  %p2086_p4 = scmp.lt.s32.totalorder %s16_s10, %s16_s10 }
   0x8   :  { %p2082_p3 = scmp.ne.s32.totalorder %s16_s10, %s2081_s18  ;;  %p2087_p5 = scmp.lt.s32.totalorder %s2081_s18, %s2081_s18 }
   0xa   :  { %p2088_p6 = por %p2087_p5, %p2086_p4 }
   0xc   :  { %p2089_p7 = pnand %p2088_p6, %p2082_p3 }
   0xe   :  { %2092 = shalt.err (!%p2089_p7)
}
   0xf   :  { %s2096_s19 = smov 128   ;;  %s2097_s20 = smov 8  }
  0x10   :  { %21 = dma.hbm_to_vmem [thread:$0]  %s2338_s1, 17792, %s16_s10, [#allocation3], %s2096_s19, %s2096_s19, %s2097_s20  }
  0x11   :  { %2093 = dma.done.wait [#allocation3], 17792  }
  0x12   :  { %2094 = vsyncadd [#allocation3], 4294949504  ;;  %v2098_v0 = vmov 0.0   ;;  %vm2099_vm0 = vmmov 0   ;;  %v2100_v1 = vmov 0.0|0.0   ;;  %vm36_vm1 = vcmask 1043456  }
  0x13   :  { %1446 = vmatprep.subr.mxu0 %v2098_v0  ;;  %1448 = vmatprep.mubr.msk.f32.mxu0 %vm2099_vm0, %v2098_v0  ;;  %vm32_vm2 = vcmask 31744   ;;  %v26_v2 = vld [vmem:[#allocation2] sm:$0xf]  ;;  %v111_v4 = vld [vmem:[#allocation2 + $0x10] sm:$0xff]  ;;  %v112_v5 = vld [vmem:[#allocation2 + $0x18] sm:$0xff]  ;;  %s2101_s26 = smov 4  }
  0x14   :  { %1826 = vmatprep.subr.bf16.mxu1 %v2100_v1  ;;  %1483 = vmatprep.mubr.msk.f32.mxu1 %vm2099_vm0, %v2098_v0  ;;  %v2140_v3 = vld [vmem:[%s2337_s0] sm:$0xff]  ;;  %v114_v7 = vld [vmem:[#allocation2 + $0x28] sm:$0xff]  ;;  %v1827_v8 = vpack.c.bf16 %v112_v5, %v111_v4  ;;  %v115_v10 = vld [vmem:[#allocation2 + $0x30] sm:$0xff]  ;;  %s2102_s27 = smov 120   ;;  %vm1245_vm14 = vcmask 7168  }
  0x15   :  { %1447 = vmatpush3.msk.msra.mxu0 %vm36_vm1, %v26_v2  ;;  %v113_v6 = vld [vmem:[#allocation2 + $0x20] sm:$0xff]  ;;  %v116_v11 = vld [vmem:[#allocation2 + $0x38] sm:$0xff]  ;;  %v118_v14 = vld [vmem:[#allocation2 + $0x48] sm:$0xff] }
  0x16   :  { %1449 = vmatmul.mubr.msk.f32.vlgmr.msra.gmra.mrb[0].mxu0 %vm32_vm2, %v2140_v3  ;;  %1850 = vmatprep.subr.bf16.mxu0 %v2100_v1  ;;  %v1830_v9 = vpack.c.bf16 %v114_v7, %v113_v6  ;;  %v1833_v12 = vpack.c.bf16 %v116_v11, %v115_v10  ;;  %v117_v13 = vld [vmem:[#allocation2 + $0x40] sm:$0xff]  ;;  %v119_v16 = vld [vmem:[#allocation2 + $0x50] sm:$0xff]  ;;  %v120_v17 = vld [vmem:[#allocation2 + $0x58] sm:$0xff] }
  0x17   :  { %1518 = vmatprep.mubr.msk.f32.mxu0 %vm2099_vm0, %v2098_v0  ;;  %1828 = vmatpush3.bf16.msra.mxu1 %v1827_v8  ;;  %v1836_v15 = vpack.c.bf16 %v118_v14, %v117_v13  ;;  %v1839_v18 = vpack.c.bf16 %v120_v17, %v119_v16  ;;  %v121_v19 = vld [vmem:[#allocation2 + $0x60] sm:$0xff]  ;;  %v122_v20 = vld [vmem:[#allocation2 + $0x68] sm:$0xff]  ;;  %v123_v22 = vld [vmem:[#allocation2 + $0x70] sm:$0xff] }
  0x18   :  { %1829 = vmatprep.subr.bf16.mxu1 %v2100_v1  ;;  %v1842_v21 = vpack.c.bf16 %v122_v20, %v121_v19  ;;  %v124_v23 = vld [vmem:[#allocation2 + $0x78] sm:$0xff]  ;;  %v125_v25 = vld [vmem:[#allocation2 + $0x80] sm:$0xff]  ;;  %v126_v26 = vld [vmem:[#allocation2 + $0x88] sm:$0xff] }
  0x19   :  { %v1845_v24 = vpack.c.bf16 %v124_v23, %v123_v22  ;;  %v1848_v27 = vpack.c.bf16 %v126_v26, %v125_v25  ;;  %v203_v28 = vld [vmem:[#allocation2 + $0x98] sm:$0xff]  ;;  %v204_v29 = vld [vmem:[#allocation2 + $0xa0] sm:$0xff]  ;;  %v205_v30 = vld [vmem:[#allocation2 + $0xa8] sm:$0xff] }
  0x1a   :  { %v1851_v31 = vpack.c.bf16 %v204_v29, %v203_v28  ;;  %v206_v32 = vld [vmem:[#allocation2 + $0xb0] sm:$0xff]  ;;  %v207_v34 = vld [vmem:[#allocation2 + $0xb8] sm:$0xff]  ;;  %v208_v35 = vld [vmem:[#allocation2 + $0xc0] sm:$0xff] }
  0x1b   :  { %1831 = vmatpush3.bf16.msra.mxu1 %v1830_v9  ;;  %v1854_v33 = vpack.c.bf16 %v206_v32, %v205_v30  ;;  %v1857_v36 = vpack.c.bf16 %v208_v35, %v207_v34  ;;  %v209_v37 = vld [vmem:[#allocation2 + $0xc8] sm:$0xff]  ;;  %v210_v38 = vld [vmem:[#allocation2 + $0xd0] sm:$0xff]  ;;  %v211_v40 = vld [vmem:[#allocation2 + $0xd8] sm:$0xff] }
  0x1c   :  { %1832 = vmatprep.subr.bf16.mxu1 %v2100_v1  ;;  %1852 = vmatpush3.bf16.msra.mxu0 %v1851_v31  ;;  %v1860_v39 = vpack.c.bf16 %v210_v38, %v209_v37  ;;  %v212_v41 = vld [vmem:[#allocation2 + $0xe0] sm:$0xff]  ;;  %v213_v43 = vld [vmem:[#allocation2 + $0xe8] sm:$0xff]  ;;  %v214_v44 = vld [vmem:[#allocation2 + $0xf0] sm:$0xff] }
  0x1d   :  { %1853 = vmatprep.subr.bf16.mxu0 %v2100_v1  ;;  %v1863_v42 = vpack.c.bf16 %v212_v41, %v211_v40  ;;  %v1866_v45 = vpack.c.bf16 %v214_v44, %v213_v43  ;;  %v215_v46 = vld [vmem:[#allocation2 + $0xf8] sm:$0xff]  ;;  %v216_v47 = vld [vmem:[#allocation2 + $0x100] sm:$0xff]  ;;  %v1252_v49 = vld [vmem:[#allocation2 + $0x8] ss:$0 sm:$0xff] }
  0x1e   :  { %v1869_v48 = vpack.c.bf16 %v216_v47, %v215_v46  ;;  %v217_v54 = vld [vmem:[#allocation2 + $0x108] sm:$0xff]  ;;  %v218_v55 = vld [vmem:[#allocation2 + $0x110] sm:$0xff]  ;;  %v295_v57 = vld [vmem:[#allocation2 + $0x120] sm:$0xff] }
  0x1f   :  { %1834 = vmatpush3.bf16.msra.mxu1 %v1833_v12  ;;  %v1872_v56 = vpack.c.bf16 %v218_v55, %v217_v54  ;;  %v296_v58 = vld [vmem:[#allocation2 + $0x128] sm:$0xff]  ;;  %v297_v59 = vld [vmem:[#allocation2 + $0x130] sm:$0xff]  ;;  %v298_v61 = vld [vmem:[#allocation2 + $0x138] sm:$0xff] }
  0x20   :  { %1835 = vmatprep.subr.bf16.mxu1 %v2100_v1  ;;  %1855 = vmatpush3.bf16.msra.mxu0 %v1854_v33  ;;  %v1875_v60 = vpack.c.bf16 %v296_v58, %v295_v57  ;;  %v1878_v62 = vpack.c.bf16 %v298_v61, %v297_v59  ;;  %v299_v63 = vld [vmem:[#allocation2 + $0x140] sm:$0xff]  ;;  %v300_v2 = vld [vmem:[#allocation2 + $0x148] sm:$0xff]  ;;  %v301_v5 = vld [vmem:[#allocation2 + $0x150] sm:$0xff] }
  0x21   :  { %1856 = vmatprep.subr.bf16.mxu0 %v2100_v1  ;;  %v1881_v4 = vpack.c.bf16 %v300_v2, %v299_v63  ;;  %v302_v6 = vld [vmem:[#allocation2 + $0x158] sm:$0xff]  ;;  %v303_v8 = vld [vmem:[#allocation2 + $0x160] sm:$0xff]  ;;  %v304_v9 = vld [vmem:[#allocation2 + $0x168] sm:$0xff] }
  0x22   :  { %v1884_v7 = vpack.c.bf16 %v302_v6, %v301_v5  ;;  %v1887_v10 = vpack.c.bf16 %v304_v9, %v303_v8  ;;  %v305_v11 = vld [vmem:[#allocation2 + $0x170] sm:$0xff]  ;;  %v306_v12 = vld [vmem:[#allocation2 + $0x178] sm:$0xff]  ;;  %v307_v14 = vld [vmem:[#allocation2 + $0x180] sm:$0xff] }
  0x23   :  { %1837 = vmatpush3.bf16.msra.mxu1 %v1836_v15  ;;  %v1890_v13 = vpack.c.bf16 %v306_v12, %v305_v11  ;;  %v308_v15 = vld [vmem:[#allocation2 + $0x188] sm:$0xff]  ;;  %v1255_v17 = vld [vmem:[#allocation2 + $0x90] ss:$0 sm:$0xff]  ;;  %v310_v23 = vld [vmem:[#allocation2 + $0x198] sm:$0xff] }
  0x24   :  { %1838 = vmatprep.subr.bf16.mxu1 %v2100_v1  ;;  %1858 = vmatpush3.bf16.msra.mxu0 %v1857_v36  ;;  %v1893_v16 = vpack.c.bf16 %v308_v15, %v307_v14  ;;  %v309_v22 = vld [vmem:[#allocation2 + $0x190] sm:$0xff]  ;;  %v387_v25 = vld [vmem:[#allocation2 + $0x1a8] sm:$0xff]  ;;  %v390_v29 = vld [vmem:[#allocation2 + $0x1c0] sm:$0xff] }
  0x25   :  { %1859 = vmatprep.subr.bf16.mxu0 %v2100_v1  ;;  %v388_v26 = vld [vmem:[#allocation2 + $0x1b0] sm:$0xff]  ;;  %v391_v31 = vld [vmem:[#allocation2 + $0x1c8] sm:$0xff]  ;;  %v393_v34 = vld [vmem:[#allocation2 + $0x1d8] sm:$0xff] }
  0x26   :  { %v1899_v28 = vpack.c.bf16 %v388_v26, %v387_v25  ;;  %v392_v32 = vld [vmem:[#allocation2 + $0x1d0] sm:$0xff]  ;;  %v394_v35 = vld [vmem:[#allocation2 + $0x1e0] sm:$0xff]  ;;  %v395_v37 = vld [vmem:[#allocation2 + $0x1e8] sm:$0xff] }
  0x27   :  { %1840 = vmatpush3.bf16.msra.mxu1 %v1839_v18  ;;  %v1905_v33 = vpack.c.bf16 %v392_v32, %v391_v31  ;;  %v1908_v36 = vpack.c.bf16 %v394_v35, %v393_v34  ;;  %v396_v38 = vld [vmem:[#allocation2 + $0x1f0] sm:$0xff]  ;;  %v397_v40 = vld [vmem:[#allocation2 + $0x1f8] sm:$0xff]  ;;  %v398_v41 = vld [vmem:[#allocation2 + $0x200] sm:$0xff] }
  0x28   :  { %1841 = vmatprep.subr.bf16.mxu1 %v2100_v1  ;;  %1861 = vmatpush3.bf16.msra.mxu0 %v1860_v39  ;;  %v1911_v39 = vpack.c.bf16 %v396_v38, %v395_v37  ;;  %v399_v43 = vld [vmem:[#allocation2 + $0x208] sm:$0xff]  ;;  %v400_v44 = vld [vmem:[#allocation2 + $0x210] sm:$0xff]  ;;  %v1256_v46 = vld [vmem:[#allocation2 + $0x118] ss:$0 sm:$0xff] }
  0x29   :  { %1862 = vmatprep.subr.bf16.mxu0 %v2100_v1  ;;  %v479_v54 = vld [vmem:[#allocation2 + $0x230] sm:$0xff]  ;;  %v480_v55 = vld [vmem:[#allocation2 + $0x238] sm:$0xff]  ;;  %v482_v58 = vld [vmem:[#allocation2 + $0x248] sm:$0xff] }
  0x2a   :  { %v1923_v57 = vpack.c.bf16 %v480_v55, %v479_v54  ;;  %v484_v61 = vld [vmem:[#allocation2 + $0x258] sm:$0xff]  ;;  %v485_v63 = vld [vmem:[#allocation2 + $0x260] sm:$0xff]  ;;  %v486_v2 = vld [vmem:[#allocation2 + $0x268] sm:$0xff] }
  0x2b   :  { %1843 = vmatpush3.bf16.msra.mxu1 %v1842_v21  ;;  %v487_v5 = vld [vmem:[#allocation2 + $0x270] sm:$0xff]  ;;  %v488_v6 = vld [vmem:[#allocation2 + $0x278] sm:$0xff]  ;;  %v489_v8 = vld [vmem:[#allocation2 + $0x280] sm:$0xff] }
  0x2c   :  { %1844 = vmatprep.subr.bf16.mxu1 %v2100_v1  ;;  %1864 = vmatpush3.bf16.msra.mxu0 %v1863_v42  ;;  %v1914_v42 = vpack.c.bf16 %v398_v41, %v397_v40  ;;  %v490_v9 = vld [vmem:[#allocation2 + $0x288] sm:$0xff]  ;;  %v491_v11 = vld [vmem:[#allocation2 + $0x290] sm:$0xff]  ;;  %v492_v12 = vld [vmem:[#allocation2 + $0x298] sm:$0xff] }
  0x2d   :  { %1865 = vmatprep.subr.bf16.mxu0 %v2100_v1  ;;  %v1257_v14 = vld [vmem:[#allocation2 + $0x1a0] ss:$0 sm:$0xff]  ;;  %v678_v25 = vld [vmem:[#allocation2 + $0x2d0] sm:$0xff]  ;;  %v683_v32 = vld [vmem:[#allocation2 + $0x2f8] sm:$0xff] }
  0x2e   :  { %v684_v34 = vld [vmem:[#allocation2 + $0x300] sm:$0xff]  ;;  %v685_v35 = vld [vmem:[#allocation2 + $0x308] sm:$0xff]  ;;  %v686_v37 = vld [vmem:[#allocation2 + $0x310] sm:$0xff] }
  0x2f   :  { %1846 = vmatpush3.bf16.msra.mxu1 %v1845_v24  ;;  %v1896_v24 = vpack.c.bf16 %v310_v23, %v309_v22  ;;  %v570_v22 = vld [vmem:[#allocation2 + $0x2b8] sm:$0xf]  ;;  %v676_v23 = vld [vmem:[#allocation2 + $0x2c0] sm:$0xff]  ;;  %v1258_v40 = vld [vmem:[#allocation2 + $0x228] ss:$0 sm:$0xff] }
  0x30   :  { %1847 = vmatprep.subr.bf16.mxu1 %v2100_v1  ;;  %1867 = vmatpush3.bf16.msra.mxu0 %v1866_v45  ;;  %v1917_v45 = vpack.c.bf16 %v400_v44, %v399_v43  ;;  %v687_v38 = vld [vmem:[#allocation2 + $0x318] sm:$0xff]  ;;  %v829_v54 = vld [vmem:[#allocation2 + $0x350] sm:$0xff] }
  0x31   :  { %1868 = vmatprep.subr.bf16.mxu0 %v2100_v1  ;;  %v830_v55 = vld [vmem:[#allocation2 + $0x358] sm:$0xff] }
  0x33   :  { %1849 = vmatpush3.bf16.msra.mxu1 %v1848_v27  ;;  %v389_v27 = vld [vmem:[#allocation2 + $0x1b8] sm:$0xff] }
  0x34   :  { %1874 = vmatprep.subr.bf16.mxu1 %v2100_v1  ;;  %1870 = vmatpush3.bf16.msra.mxu0 %v1869_v48  ;;  %v1902_v30 = vpack.c.bf16 %v390_v29, %v389_v27  ;;  %v679_v27 = vld [vmem:[#allocation2 + $0x2d8] sm:$0xff]  ;;  %v680_v29 = vld [vmem:[#allocation2 + $0x2e0] sm:$0xff] }
  0x35   :  { %1871 = vmatprep.subr.bf16.mxu0 %v2100_v1 }
  0x38   :  { %1873 = vmatpush3.bf16.msra.mxu0 %v1872_v56  ;;  %v481_v56 = vld [vmem:[#allocation2 + $0x240] sm:$0xff] }
  0x39   :  { %1898 = vmatprep.subr.bf16.mxu0 %v2100_v1  ;;  %v1926_v59 = vpack.c.bf16 %v482_v58, %v481_v56 }
  0xe9   :  { %v106_v50 = vpop.f32.mrb[0].mxu0 }
  0xea   :  { %v107_v51 = vadd.f32 %v1252_v49, %v106_v50  ;;  %v1450_v52 = vpop.f32.mrb[1].mxu0 }
  0xeb   :  { %v402_v52 = vld [vmem:[#allocation2 + $0x220] sm:$0xff] }
  0xec   :  { %v110_v53 = vmax.f32 %v107_v51, 0.0  ;;  %v401_v51 = vld [vmem:[#allocation2 + $0x218] sm:$0xff] }
  0xee   :  { %1484 = vmatmul.mubr.f32.vlgmr.msra.gmra.mrb[0].mxu1 %v110_v53  ;;  %v1920_v53 = vpack.c.bf16 %v402_v52, %v401_v51  ;;  %v691_v51 = vld [vmem:[#allocation2 + $0x338] sm:$0xff] }
  0xef   :  { %1553 = vmatprep.mubr.msk.f32.mxu1 %vm2099_vm0, %v2098_v0  ;;  %1876 = vmatpush3.bf16.msra.mxu1 %v1875_v60  ;;  %v483_v60 = vld [vmem:[#allocation2 + $0x250] sm:$0xff] }
  0xf0   :  { %1877 = vmatprep.subr.bf16.mxu1 %v2100_v1 }
  0xf3   :  { %1879 = vmatpush3.bf16.msra.mxu1 %v1878_v62  ;;  %v1929_v62 = vpack.c.bf16 %v484_v61, %v483_v60  ;;  %v833_v60 = vld [vmem:[#allocation2 + $0x370] sm:$0xff] }
  0xf4   :  { %1880 = vmatprep.subr.bf16.mxu1 %v2100_v1 }
  0xf7   :  { %1882 = vmatpush3.bf16.msra.mxu1 %v1881_v4  ;;  %v1932_v4 = vpack.c.bf16 %v486_v2, %v485_v63  ;;  %v835_v63 = vld [vmem:[#allocation2 + $0x380] sm:$0xff] }
  0xf8   :  { %1883 = vmatprep.subr.bf16.mxu1 %v2100_v1 }
  0xfb   :  { %1885 = vmatpush3.bf16.msra.mxu1 %v1884_v7  ;;  %v1935_v7 = vpack.c.bf16 %v488_v6, %v487_v5  ;;  %v837_v5 = vld [vmem:[#allocation2 + $0x390] sm:$0xff] }
  0xfc   :  { %1886 = vmatprep.subr.bf16.mxu1 %v2100_v1 }
  0xff   :  { %1888 = vmatpush3.bf16.msra.mxu1 %v1887_v10  ;;  %v1938_v10 = vpack.c.bf16 %v490_v9, %v489_v8  ;;  %v839_v8 = vld [vmem:[#allocation2 + $0x3a0] sm:$0xff] }
 0x100   :  { %1889 = vmatprep.subr.bf16.mxu1 %v2100_v1 }
 0x103   :  { %1891 = vmatpush3.bf16.msra.mxu1 %v1890_v13  ;;  %v1941_v13 = vpack.c.bf16 %v492_v12, %v491_v11  ;;  %v841_v11 = vld [vmem:[#allocation2 + $0x3b0] sm:$0xff] }
 0x104   :  { %1892 = vmatprep.subr.bf16.mxu1 %v2100_v1 }
 0x107   :  { %1894 = vmatpush3.bf16.msra.mxu1 %v1893_v16 }
 0x108   :  { %1895 = vmatprep.subr.bf16.mxu1 %v2100_v1 }
 0x10b   :  { %1897 = vmatpush3.bf16.msra.mxu1 %v1896_v24  ;;  %v677_v24 = vld [vmem:[#allocation2 + $0x2c8] sm:$0xff] }
 0x10c   :  { %1922 = vmatprep.subr.bf16.mxu1 %v2100_v1  ;;  %v1947_v26 = vpack.c.bf16 %v677_v24, %v676_v23 }
 0x1c1   :  { %v198_v18 = vpop.f32.mrb[0].mxu1 }
 0x1c2   :  { %v199_v19 = vadd.f32 %v1255_v17, %v198_v18  ;;  %v1485_v20 = vpop.f32.mrb[1].mxu1 }
 0x1c3   :  { %v494_v20 = vld [vmem:[#allocation2 + $0x2a8] sm:$0xff] }
 0x1c4   :  { %v202_v21 = vmax.f32 %v199_v19, 0.0  ;;  %v493_v19 = vld [vmem:[#allocation2 + $0x2a0] sm:$0xff] }
 0x1c6   :  { %1519 = vmatmul.mubr.f32.vlgmr.msra.gmra.mrb[2].mxu0 %v202_v21  ;;  %v1944_v21 = vpack.c.bf16 %v494_v20, %v493_v19 }
 0x1c7   :  { %1588 = vmatprep.mubr.msk.f32.mxu0 %vm2099_vm0, %v2098_v0  ;;  %1900 = vmatpush3.bf16.msra.mxu0 %v1899_v28  ;;  %v1950_v28 = vpack.c.bf16 %v679_v27, %v678_v25 }
 0x1c8   :  { %1901 = vmatprep.subr.bf16.mxu0 %v2100_v1 }
 0x1cb   :  { %1903 = vmatpush3.bf16.msra.mxu0 %v1902_v30  ;;  %v681_v30 = vld [vmem:[#allocation2 + $0x2e8] sm:$0xff] }
 0x1cc   :  { %1904 = vmatprep.subr.bf16.mxu0 %v2100_v1  ;;  %v1953_v31 = vpack.c.bf16 %v681_v30, %v680_v29 }
 0x1cf   :  { %1906 = vmatpush3.bf16.msra.mxu0 %v1905_v33 }
 0x1d0   :  { %1907 = vmatprep.subr.bf16.mxu0 %v2100_v1 }
 0x1d3   :  { %1909 = vmatpush3.bf16.msra.mxu0 %v1908_v36  ;;  %v1959_v36 = vpack.c.bf16 %v685_v35, %v684_v34 }
 0x1d4   :  { %1910 = vmatprep.subr.bf16.mxu0 %v2100_v1 }
 0x1d7   :  { %1912 = vmatpush3.bf16.msra.mxu0 %v1911_v39  ;;  %v1962_v39 = vpack.c.bf16 %v687_v38, %v686_v37 }
 0x1d8   :  { %1913 = vmatprep.subr.bf16.mxu0 %v2100_v1 }
 0x1db   :  { %1915 = vmatpush3.bf16.msra.mxu0 %v1914_v42 }
 0x1dc   :  { %1916 = vmatprep.subr.bf16.mxu0 %v2100_v1 }
 0x1df   :  { %1918 = vmatpush3.bf16.msra.mxu0 %v1917_v45  ;;  %v688_v45 = vld [vmem:[#allocation2 + $0x320] sm:$0xff] }
 0x1e0   :  { %1919 = vmatprep.subr.bf16.mxu0 %v2100_v1 }
 0x1e3   :  { %1921 = vmatpush3.bf16.msra.mxu0 %v1920_v53  ;;  %v828_v53 = vld [vmem:[#allocation2 + $0x348] sm:$0xff] }
 0x1e4   :  { %1626 = vmatprep.subr.mxu0 %v2098_v0  ;;  %v1971_v56 = vpack.c.bf16 %v829_v54, %v828_v53  ;;  %v982_v53 = vld [vmem:[#allocation2 + $0x3e0] sm:$0xff] }
 0x299   :  { %v290_v47 = vpop.f32.mrb[2].mxu0 }
 0x29a   :  { %v291_v48 = vadd.f32 %v1256_v46, %v290_v47  ;;  %v1520_v49 = vpop.f32.mrb[3].mxu0  ;;  %v689_v46 = vld [vmem:[#allocation2 + $0x328] sm:$0xff] }
 0x29b   :  { %v1965_v47 = vpack.c.bf16 %v689_v46, %v688_v45 }
 0x29c   :  { %v294_v50 = vmax.f32 %v291_v48, 0.0 }
 0x29e   :  { %1554 = vmatmul.mubr.f32.vlgmr.msra.gmra.mrb[2].mxu1 %v294_v50  ;;  %v690_v50 = vld [vmem:[#allocation2 + $0x330] sm:$0xff] }
 0x29f   :  { %1623 = vmatprep.mubr.msk.f32.mxu1 %vm2099_vm0, %v2098_v0  ;;  %1924 = vmatpush3.bf16.msra.mxu1 %v1923_v57  ;;  %v1968_v52 = vpack.c.bf16 %v691_v51, %v690_v50  ;;  %v831_v57 = vld [vmem:[#allocation2 + $0x360] sm:$0xff]  ;;  %v980_v51 = vld [vmem:[#allocation2 + $0x3d0] sm:$0xff] }
 0x2a0   :  { %1925 = vmatprep.subr.bf16.mxu1 %v2100_v1  ;;  %v1974_v58 = vpack.c.bf16 %v831_v57, %v830_v55  ;;  %v983_v55 = vld [vmem:[#allocation2 + $0x3e8] sm:$0xff]  ;;  %v984_v57 = vld [vmem:[#allocation2 + $0x3f0] sm:$0xff] }
 0x2a3   :  { %1927 = vmatpush3.bf16.msra.mxu1 %v1926_v59  ;;  %v832_v59 = vld [vmem:[#allocation2 + $0x368] sm:$0xff] }
 0x2a4   :  { %1928 = vmatprep.subr.bf16.mxu1 %v2100_v1  ;;  %v1977_v61 = vpack.c.bf16 %v833_v60, %v832_v59  ;;  %v986_v60 = vld [vmem:[#allocation2 + $0x400] sm:$0xff] }
 0x2a7   :  { %1930 = vmatpush3.bf16.msra.mxu1 %v1929_v62  ;;  %v834_v62 = vld [vmem:[#allocation2 + $0x378] sm:$0xff] }
 0x2a8   :  { %1931 = vmatprep.subr.bf16.mxu1 %v2100_v1  ;;  %v1980_v2 = vpack.c.bf16 %v835_v63, %v834_v62  ;;  %v988_v63 = vld [vmem:[#allocation2 + $0x410] sm:$0xff] }
 0x2ab   :  { %1933 = vmatpush3.bf16.msra.mxu1 %v1932_v4  ;;  %v836_v4 = vld [vmem:[#allocation2 + $0x388] sm:$0xff] }
 0x2ac   :  { %1934 = vmatprep.subr.bf16.mxu1 %v2100_v1  ;;  %v1983_v6 = vpack.c.bf16 %v837_v5, %v836_v4  ;;  %v990_v5 = vld [vmem:[#allocation2 + $0x420] sm:$0xff] }
 0x2af   :  { %1936 = vmatpush3.bf16.msra.mxu1 %v1935_v7  ;;  %v838_v7 = vld [vmem:[#allocation2 + $0x398] sm:$0xff] }
 0x2b0   :  { %1937 = vmatprep.subr.bf16.mxu1 %v2100_v1  ;;  %v1986_v9 = vpack.c.bf16 %v839_v8, %v838_v7  ;;  %v992_v8 = vld [vmem:[#allocation2 + $0x430] sm:$0xff] }
 0x2b3   :  { %1939 = vmatpush3.bf16.msra.mxu1 %v1938_v10  ;;  %v840_v10 = vld [vmem:[#allocation2 + $0x3a8] sm:$0xff] }
 0x2b4   :  { %1940 = vmatprep.subr.bf16.mxu1 %v2100_v1  ;;  %v1989_v12 = vpack.c.bf16 %v841_v11, %v840_v10  ;;  %v2249_v11 = vld [vmem:[#allocation2 + $0x340] ss:$0 sm:$0xff] }
 0x2b7   :  { %1942 = vmatpush3.bf16.msra.mxu1 %v1941_v13  ;;  %v1259_v13 = vld [vmem:[#allocation2 + $0x2b0] ss:$0 sm:$0xff] }
 0x2b8   :  { %1943 = vmatprep.subr.bf16.mxu1 %v2100_v1 }
 0x2bb   :  { %1945 = vmatpush3.bf16.msra.mxu1 %v1944_v21 }
 0x2bc   :  { %1970 = vmatprep.subr.bf16.mxu1 %v2100_v1 }
 0x371   :  { %v382_v15 = vpop.f32.mrb[2].mxu1 }
 0x372   :  { %v383_v16 = vadd.f32 %v1257_v14, %v382_v15  ;;  %v1555_v17 = vpop.f32.mrb[3].mxu1 }
 0x374   :  { %v386_v18 = vmax.f32 %v383_v16, 0.0 }
 0x376   :  { %1589 = vmatmul.mubr.f32.vlgmr.msra.gmra.mrb[4].mxu0 %v386_v18 }
 0x377   :  { %1628 = vmatprep.mubr.msk.f32.mxu0 %vm2099_vm0, %v2098_v0  ;;  %1627 = vmatpush3.msk.msra.mxu0 %vm36_vm1, %v570_v22 }
 0x378   :  { %1946 = vmatprep.subr.bf16.mxu0 %v2100_v1 }
 0x37a   :  { %1629 = vmatmul.mubr.msk.f32.vlgmr.msra.gmra.mrb[6].mxu0 %vm32_vm2, %v2140_v3  ;;  %v682_v3 = vld [vmem:[#allocation2 + $0x2f0] sm:$0xff] }
 0x37b   :  { %1663 = vmatprep.mubr.msk.f32.mxu0 %vm2099_vm0, %v2098_v0  ;;  %1948 = vmatpush3.bf16.msra.mxu0 %v1947_v26  ;;  %v1956_v33 = vpack.c.bf16 %v683_v32, %v682_v3 }
 0x37c   :  { %1949 = vmatprep.subr.bf16.mxu0 %v2100_v1 }
 0x37f   :  { %1951 = vmatpush3.bf16.msra.mxu0 %v1950_v28 }
 0x380   :  { %1952 = vmatprep.subr.bf16.mxu0 %v2100_v1 }
 0x383   :  { %1954 = vmatpush3.bf16.msra.mxu0 %v1953_v31 }
 0x384   :  { %1955 = vmatprep.subr.bf16.mxu0 %v2100_v1 }
 0x387   :  { %1957 = vmatpush3.bf16.msra.mxu0 %v1956_v33 }
 0x388   :  { %1958 = vmatprep.subr.bf16.mxu0 %v2100_v1 }
 0x38b   :  { %1960 = vmatpush3.bf16.msra.mxu0 %v1959_v36 }
 0x38c   :  { %1961 = vmatprep.subr.bf16.mxu0 %v2100_v1 }
 0x38f   :  { %1963 = vmatpush3.bf16.msra.mxu0 %v1962_v39 }
 0x390   :  { %1964 = vmatprep.subr.bf16.mxu0 %v2100_v1 }
 0x393   :  { %1966 = vmatpush3.bf16.msra.mxu0 %v1965_v47 }
 0x394   :  { %1967 = vmatprep.subr.bf16.mxu0 %v2100_v1 }
 0x397   :  { %1969 = vmatpush3.bf16.msra.mxu0 %v1968_v52  ;;  %v981_v52 = vld [vmem:[#allocation2 + $0x3d8] sm:$0xff] }
 0x398   :  { %1994 = vmatprep.subr.bf16.mxu0 %v2100_v1  ;;  %v1995_v54 = vpack.c.bf16 %v981_v52, %v980_v51 }
 0x449   :  { %v474_v41 = vpop.f32.mrb[4].mxu0 }
 0x44a   :  { %v475_v42 = vadd.f32 %v1258_v40, %v474_v41  ;;  %v1590_v43 = vpop.f32.mrb[5].mxu0 }
 0x44c   :  { %v478_v44 = vmax.f32 %v475_v42, 0.0 }
 0x44d   :  { %v640_v48 = vpop.f32.mrb[6].mxu0 }
 0x44e   :  { %1624 = vmatmul.mubr.f32.vlgmr.msra.gmra.mrb[4].mxu1 %v478_v44  ;;  %v1630_v49 = vpop.f32.mrb[7].mxu0  ;;  %v646_v14 = vmul.f32 0.97552824, %v640_v48  ;;  %v649_v15 = vmul.f32 0.9045085, %v640_v48  ;;  %v658_v19 = vmul.f32 0.5, %v640_v48 }
 0x44f   :  { %1728 = vmatprep.mubr.msk.f32.mxu1 %vm2099_vm0, %v2098_v0  ;;  %1972 = vmatpush3.bf16.msra.mxu1 %v1971_v56  ;;  %v652_v16 = vmul.f32 0.7938926, %v640_v48  ;;  %v655_v17 = vmul.f32 0.6545085, %v640_v48  ;;  %v661_v20 = vmul.f32 0.3454915, %v640_v48  ;;  %v1998_v56 = vpack.c.bf16 %v983_v55, %v982_v53 }
 0x450   :  { %1973 = vmatprep.subr.bf16.mxu1 %v2100_v1  ;;  %v664_v21 = vmul.f32 0.20610738, %v640_v48  ;;  %v667_v24 = vmul.f32 0.095491506, %v640_v48  ;;  %v670_v25 = vmul.f32 0.024471741, %v640_v48 }
 0x451   :  { %v673_v26 = vmul.f32 0.0, %v640_v48  ;;  %v843_v49 = vld [vmem:[#allocation2 + $0x3c0] sm:$0xff]  ;;  %v995_v55 = vld [vmem:[#allocation2 + $0x448] sm:$0xff] }
 0x453   :  { %1975 = vmatpush3.bf16.msra.mxu1 %v1974_v58  ;;  %v985_v58 = vld [vmem:[#allocation2 + $0x3f8] sm:$0xff] }
 0x454   :  { %1976 = vmatprep.subr.bf16.mxu1 %v2100_v1  ;;  %v2001_v59 = vpack.c.bf16 %v985_v58, %v984_v57  ;;  %v1263_v57 = vld [vmem:[#allocation2 + $0x3c8] ss:$0 sm:$0xff] }
 0x457   :  { %1978 = vmatpush3.bf16.msra.mxu1 %v1977_v61  ;;  %v987_v61 = vld [vmem:[#allocation2 + $0x408] sm:$0xff] }
 0x458   :  { %1979 = vmatprep.subr.bf16.mxu1 %v2100_v1  ;;  %v2004_v62 = vpack.c.bf16 %v987_v61, %v986_v60 }
 0x45b   :  { %1981 = vmatpush3.bf16.msra.mxu1 %v1980_v2  ;;  %v989_v2 = vld [vmem:[#allocation2 + $0x418] sm:$0xff] }
 0x45c   :  { %1982 = vmatprep.subr.bf16.mxu1 %v2100_v1  ;;  %v2007_v4 = vpack.c.bf16 %v989_v2, %v988_v63 }
 0x45f   :  { %1984 = vmatpush3.bf16.msra.mxu1 %v1983_v6  ;;  %v991_v6 = vld [vmem:[#allocation2 + $0x428] sm:$0xff] }
 0x460   :  { %1985 = vmatprep.subr.bf16.mxu1 %v2100_v1  ;;  %v2010_v7 = vpack.c.bf16 %v991_v6, %v990_v5 }
 0x463   :  { %1987 = vmatpush3.bf16.msra.mxu1 %v1986_v9  ;;  %v993_v9 = vld [vmem:[#allocation2 + $0x438] sm:$0xff] }
 0x464   :  { %1988 = vmatprep.subr.bf16.mxu1 %v2100_v1  ;;  %v2013_v10 = vpack.c.bf16 %v993_v9, %v992_v8 }
 0x467   :  { %1990 = vmatpush3.bf16.msra.mxu1 %v1989_v12 }
 0x468   :  { %1991 = vmatprep.subr.bf16.mxu1 %v2100_v1 }
 0x521   :  { %v566_v18 = vpop.f32.mrb[4].mxu1 }
 0x522   :  { %v567_v22 = vadd.f32 %v1259_v13, %v566_v18  ;;  %v1625_v23 = vpop.f32.mrb[5].mxu1 }
 0x524   :  { %v644_v27 = vadd.f32 %v640_v48, %v567_v22  ;;  %v647_v28 = vadd.f32 %v646_v14, %v567_v22  ;;  %v650_v29 = vadd.f32 %v649_v15, %v567_v22  ;;  %v653_v30 = vadd.f32 %v652_v16, %v567_v22  ;;  %v842_v48 = vld [vmem:[#allocation2 + $0x3b8] sm:$0xff] }
 0x525   :  { %v656_v31 = vadd.f32 %v655_v17, %v567_v22  ;;  %v659_v3 = vadd.f32 %v658_v19, %v567_v22  ;;  %v662_v32 = vadd.f32 %v661_v20, %v567_v22  ;;  %v665_v33 = vadd.f32 %v664_v21, %v567_v22 }
 0x526   :  { %v645_v34 = vmax.f32 %v644_v27, 0.0  ;;  %v668_v35 = vadd.f32 %v667_v24, %v567_v22  ;;  %v671_v36 = vadd.f32 %v670_v25, %v567_v22  ;;  %v674_v37 = vadd.f32 %v673_v26, %v567_v22 }
 0x527   :  { %v648_v38 = vmax.f32 %v647_v28, 0.0  ;;  %v651_v39 = vmax.f32 %v650_v29, 0.0  ;;  %v654_v40 = vmax.f32 %v653_v30, 0.0  ;;  %v657_v41 = vmax.f32 %v656_v31, 0.0 }
 0x528   :  { %1664 = vmatmul.mubr.f32.vlgmr.msra.gmra.mrb[8].mxu0 %v645_v34  ;;  %v660_v42 = vmax.f32 %v659_v3, 0.0  ;;  %v663_v43 = vmax.f32 %v662_v32, 0.0  ;;  %v666_v44 = vmax.f32 %v665_v33, 0.0  ;;  %v669_v45 = vmax.f32 %v668_v35, 0.0 }
 0x529   :  { %1666 = vmatprep.mubr.msk.f32.mxu0 %vm2099_vm0, %v2098_v0  ;;  %v672_v46 = vmax.f32 %v671_v36, 0.0  ;;  %v675_v47 = vmax.f32 %v674_v37, 0.0  ;;  %v1992_v50 = vpack.c.bf16 %v843_v49, %v842_v48  ;;  %1996 = vmatpush3.bf16.msra.mxu0 %v1995_v54 }
 0x52a   :  { %1997 = vmatprep.subr.bf16.mxu0 %v2100_v1 }
 0x52b   :  { %1993 = vmatpush3.bf16.msra.mxu1 %v1992_v50 }
 0x52c   :  { %1667 = vmatmul.mubr.f32.gmra.mrb[10].mxu0 %v648_v38  ;;  %2018 = vmatprep.subr.bf16.mxu1 %v2100_v1 }
 0x52d   :  { %1669 = vmatprep.mubr.msk.f32.mxu0 %vm2099_vm0, %v2098_v0  ;;  %1999 = vmatpush3.bf16.msra.mxu0 %v1998_v56 }
 0x52e   :  { %2000 = vmatprep.subr.bf16.mxu0 %v2100_v1 }
 0x530   :  { %1670 = vmatmul.mubr.f32.gmra.mrb[12].mxu0 %v651_v39 }
 0x531   :  { %1672 = vmatprep.mubr.msk.f32.mxu0 %vm2099_vm0, %v2098_v0  ;;  %2002 = vmatpush3.bf16.msra.mxu0 %v2001_v59 }
 0x532   :  { %2003 = vmatprep.subr.bf16.mxu0 %v2100_v1 }
 0x534   :  { %1673 = vmatmul.mubr.f32.gmra.mrb[14].mxu0 %v654_v40 }
 0x535   :  { %1675 = vmatprep.mubr.msk.f32.mxu0 %vm2099_vm0, %v2098_v0  ;;  %2005 = vmatpush3.bf16.msra.mxu0 %v2004_v62 }
 0x536   :  { %2006 = vmatprep.subr.bf16.mxu0 %v2100_v1 }
 0x538   :  { %1676 = vmatmul.mubr.f32.gmra.mrb[16].mxu0 %v657_v41 }
 0x539   :  { %1678 = vmatprep.mubr.msk.f32.mxu0 %vm2099_vm0, %v2098_v0  ;;  %2008 = vmatpush3.bf16.msra.mxu0 %v2007_v4 }
 0x53a   :  { %2009 = vmatprep.subr.bf16.mxu0 %v2100_v1 }
 0x53c   :  { %1679 = vmatmul.mubr.f32.gmra.mrb[18].mxu0 %v660_v42 }
 0x53d   :  { %1681 = vmatprep.mubr.msk.f32.mxu0 %vm2099_vm0, %v2098_v0  ;;  %2011 = vmatpush3.bf16.msra.mxu0 %v2010_v7 }
 0x53e   :  { %2012 = vmatprep.subr.bf16.mxu0 %v2100_v1 }
 0x540   :  { %1682 = vmatmul.mubr.f32.gmra.mrb[20].mxu0 %v663_v43 }
 0x541   :  { %1684 = vmatprep.mubr.msk.f32.mxu0 %vm2099_vm0, %v2098_v0  ;;  %2014 = vmatpush3.bf16.msra.mxu0 %v2013_v10 }
 0x542   :  { %2015 = vmatprep.subr.bf16.mxu0 %v2100_v1 }
 0x544   :  { %1685 = vmatmul.mubr.f32.gmra.mrb[22].mxu0 %v666_v44 }
 0x545   :  { %1687 = vmatprep.mubr.msk.f32.mxu0 %vm2099_vm0, %v2098_v0 }
 0x548   :  { %1688 = vmatmul.mubr.f32.gmra.mrb[24].mxu0 %v669_v45 }
 0x549   :  { %1690 = vmatprep.mubr.msk.f32.mxu0 %vm2099_vm0, %v2098_v0 }
 0x54c   :  { %1691 = vmatmul.mubr.f32.gmra.mrb[26].mxu0 %v672_v46 }
 0x54d   :  { %1693 = vmatprep.mubr.msk.f32.mxu0 %vm2099_vm0, %v2098_v0 }
 0x550   :  { %1694 = vmatmul.mubr.f32.gmra.mrb[28].mxu0 %v675_v47 }
 0x551   :  { %1793 = vmatprep.mubr.msk.f32.mxu0 %vm2099_vm0, %v2098_v0 }
 0x5fb   :  { %v763_v12 = vpop.f32.mrb[8].mxu0 }
 0x5fc   :  { %v764_v13 = vadd.f32 %v2249_v11, %v763_v12  ;;  %v1665_v14 = vpop.f32.mrb[9].mxu0 }
 0x5fe   :  { %v817_v15 = vmax.f32 %v764_v13, 0.0 }
 0x5ff   :  { %v768_v16 = vpop.f32.mrb[10].mxu0 }
 0x600   :  { %v769_v17 = vadd.f32 %v2249_v11, %v768_v16  ;;  %v1668_v18 = vpop.f32.mrb[11].mxu0  ;;  %1729 = vmatmul.mubr.f32.vlgmr.msra.gmra.mrb[6].mxu1 %v817_v15 }
 0x601   :  { %1731 = vmatprep.mubr.msk.f32.mxu1 %vm2099_vm0, %v2098_v0  ;;  %2026 = vmatpush3.bf16.msra.mxu1 %v1995_v54  ;;  %v994_v54 = vld [vmem:[#allocation2 + $0x440] sm:$0xff] }
 0x602   :  { %v818_v19 = vmax.f32 %v769_v17, 0.0  ;;  %2019 = vmatprep.subr.bf16.mxu1 %v2100_v1 }
 0x603   :  { %v773_v20 = vpop.f32.mrb[12].mxu0 }
 0x604   :  { %v774_v21 = vadd.f32 %v2249_v11, %v773_v20  ;;  %v1671_v22 = vpop.f32.mrb[13].mxu0  ;;  %1732 = vmatmul.mubr.f32.gmra.mrb[8].mxu1 %v818_v19 }
 0x605   :  { %1734 = vmatprep.mubr.msk.f32.mxu1 %vm2099_vm0, %v2098_v0  ;;  %2027 = vmatpush3.bf16.msra.mxu1 %v1998_v56  ;;  %v2016_v56 = vpack.c.bf16 %v995_v55, %v994_v54 }
 0x606   :  { %v819_v23 = vmax.f32 %v774_v21, 0.0  ;;  %2020 = vmatprep.subr.bf16.mxu1 %v2100_v1 }
 0x607   :  { %v778_v24 = vpop.f32.mrb[14].mxu0  ;;  %2017 = vmatpush3.bf16.msra.mxu0 %v2016_v56 }
 0x608   :  { %v779_v25 = vadd.f32 %v2249_v11, %v778_v24  ;;  %v1674_v26 = vpop.f32.mrb[15].mxu0  ;;  %1735 = vmatmul.mubr.f32.gmra.mrb[10].mxu1 %v819_v23 }
 0x609   :  { %1737 = vmatprep.mubr.msk.f32.mxu1 %vm2099_vm0, %v2098_v0  ;;  %2028 = vmatpush3.bf16.msra.mxu1 %v2001_v59 }
 0x60a   :  { %v820_v27 = vmax.f32 %v779_v25, 0.0  ;;  %2021 = vmatprep.subr.bf16.mxu1 %v2100_v1 }
 0x60b   :  { %v783_v28 = vpop.f32.mrb[16].mxu0 }
 0x60c   :  { %v784_v29 = vadd.f32 %v2249_v11, %v783_v28  ;;  %v1677_v30 = vpop.f32.mrb[17].mxu0  ;;  %1738 = vmatmul.mubr.f32.gmra.mrb[12].mxu1 %v820_v27 }
 0x60d   :  { %1740 = vmatprep.mubr.msk.f32.mxu1 %vm2099_vm0, %v2098_v0  ;;  %2029 = vmatpush3.bf16.msra.mxu1 %v2004_v62 }
 0x60e   :  { %v821_v31 = vmax.f32 %v784_v29, 0.0  ;;  %2022 = vmatprep.subr.bf16.mxu1 %v2100_v1 }
 0x60f   :  { %v788_v3 = vpop.f32.mrb[18].mxu0 }
 0x610   :  { %v789_v32 = vadd.f32 %v2249_v11, %v788_v3  ;;  %v1680_v33 = vpop.f32.mrb[19].mxu0  ;;  %1741 = vmatmul.mubr.f32.gmra.mrb[14].mxu1 %v821_v31 }
 0x611   :  { %1743 = vmatprep.mubr.msk.f32.mxu1 %vm2099_vm0, %v2098_v0  ;;  %2030 = vmatpush3.bf16.msra.mxu1 %v2007_v4 }
 0x612   :  { %v822_v34 = vmax.f32 %v789_v32, 0.0  ;;  %2023 = vmatprep.subr.bf16.mxu1 %v2100_v1 }
 0x613   :  { %v793_v35 = vpop.f32.mrb[20].mxu0 }
 0x614   :  { %v794_v36 = vadd.f32 %v2249_v11, %v793_v35  ;;  %v1683_v37 = vpop.f32.mrb[21].mxu0  ;;  %1744 = vmatmul.mubr.f32.gmra.mrb[16].mxu1 %v822_v34 }
 0x615   :  { %1746 = vmatprep.mubr.msk.f32.mxu1 %vm2099_vm0, %v2098_v0  ;;  %2031 = vmatpush3.bf16.msra.mxu1 %v2010_v7 }
 0x616   :  { %v823_v38 = vmax.f32 %v794_v36, 0.0  ;;  %2024 = vmatprep.subr.bf16.mxu1 %v2100_v1 }
 0x617   :  { %v798_v39 = vpop.f32.mrb[22].mxu0 }
 0x618   :  { %v799_v40 = vadd.f32 %v2249_v11, %v798_v39  ;;  %v1686_v41 = vpop.f32.mrb[23].mxu0  ;;  %1747 = vmatmul.mubr.f32.gmra.mrb[18].mxu1 %v823_v38 }
 0x619   :  { %1749 = vmatprep.mubr.msk.f32.mxu1 %vm2099_vm0, %v2098_v0  ;;  %2032 = vmatpush3.bf16.msra.mxu1 %v2013_v10 }
 0x61a   :  { %v824_v42 = vmax.f32 %v799_v40, 0.0  ;;  %2025 = vmatprep.subr.bf16.mxu1 %v2100_v1  ;;  %v2309_v40 = vld [vmem:[#allocation2 + $0x450] ss:$0 sm:$0xff] }
 0x61b   :  { %v803_v43 = vpop.f32.mrb[24].mxu0 }
 0x61c   :  { %v804_v44 = vadd.f32 %v2249_v11, %v803_v43  ;;  %v1689_v45 = vpop.f32.mrb[25].mxu0  ;;  %1750 = vmatmul.mubr.f32.gmra.mrb[20].mxu1 %v824_v42 }
 0x61d   :  { %1752 = vmatprep.mubr.msk.f32.mxu1 %vm2099_vm0, %v2098_v0  ;;  %2033 = vmatpush3.bf16.msra.mxu1 %v2016_v56 }
 0x61e   :  { %v825_v46 = vmax.f32 %v804_v44, 0.0 }
 0x61f   :  { %v808_v47 = vpop.f32.mrb[26].mxu0 }
 0x620   :  { %v809_v48 = vadd.f32 %v2249_v11, %v808_v47  ;;  %v1692_v49 = vpop.f32.mrb[27].mxu0  ;;  %1753 = vmatmul.mubr.f32.gmra.mrb[22].mxu1 %v825_v46 }
 0x621   :  { %1755 = vmatprep.mubr.msk.f32.mxu1 %vm2099_vm0, %v2098_v0 }
 0x622   :  { %v826_v50 = vmax.f32 %v809_v48, 0.0 }
 0x623   :  { %v813_v51 = vpop.f32.mrb[28].mxu0 }
 0x624   :  { %v814_v1 = vadd.f32 %v2249_v11, %v813_v51  ;;  %v1695_v52 = vpop.f32.mrb[29].mxu0  ;;  %1756 = vmatmul.mubr.f32.gmra.mrb[24].mxu1 %v826_v50 }
 0x625   :  { %1758 = vmatprep.mubr.msk.f32.mxu1 %vm2099_vm0, %v2098_v0 }
 0x626   :  { %v827_v53 = vmax.f32 %v814_v1, 0.0 }
 0x628   :  { %1759 = vmatmul.mubr.f32.gmra.mrb[26].mxu1 %v827_v53 }
 0x629   :  { %1820 = vmatprep.mubr.msk.f32.mxu1 %vm2099_vm0, %v2098_v0 }
 0x6d3   :  { %v915_v58 = vpop.f32.mrb[6].mxu1 }
 0x6d4   :  { %v916_v59 = vadd.f32 %v1263_v57, %v915_v58  ;;  %v1730_v60 = vpop.f32.mrb[7].mxu1 }
 0x6d6   :  { %v969_v61 = vmax.f32 %v916_v59, 0.0 }
 0x6d7   :  { %v920_v62 = vpop.f32.mrb[8].mxu1 }
 0x6d8   :  { %v921_v63 = vadd.f32 %v1263_v57, %v920_v62  ;;  %v1733_v2 = vpop.f32.mrb[9].mxu1  ;;  %1794 = vmatmul.mubr.f32.vlgmr.msra.gmra.mrb[30].mxu0 %v969_v61 }
 0x6d9   :  { %1796 = vmatprep.mubr.msk.f32.mxu0 %vm2099_vm0, %v2098_v0 }
 0x6da   :  { %v970_v4 = vmax.f32 %v921_v63, 0.0 }
 0x6db   :  { %v925_v5 = vpop.f32.mrb[10].mxu1 }
 0x6dc   :  { %v926_v6 = vadd.f32 %v1263_v57, %v925_v5  ;;  %v1736_v7 = vpop.f32.mrb[11].mxu1  ;;  %1797 = vmatmul.mubr.f32.gmra.mrb[32].mxu0 %v970_v4 }
 0x6dd   :  { %1799 = vmatprep.mubr.msk.f32.mxu0 %vm2099_vm0, %v2098_v0 }
 0x6de   :  { %v971_v8 = vmax.f32 %v926_v6, 0.0 }
 0x6df   :  { %v930_v9 = vpop.f32.mrb[12].mxu1 }
 0x6e0   :  { %v931_v10 = vadd.f32 %v1263_v57, %v930_v9  ;;  %v1739_v11 = vpop.f32.mrb[13].mxu1  ;;  %1800 = vmatmul.mubr.f32.gmra.mrb[34].mxu0 %v971_v8 }
 0x6e1   :  { %1802 = vmatprep.mubr.msk.f32.mxu0 %vm2099_vm0, %v2098_v0 }
 0x6e2   :  { %v972_v12 = vmax.f32 %v931_v10, 0.0 }
 0x6e3   :  { %v935_v13 = vpop.f32.mrb[14].mxu1 }
 0x6e4   :  { %v936_v14 = vadd.f32 %v1263_v57, %v935_v13  ;;  %v1742_v15 = vpop.f32.mrb[15].mxu1  ;;  %1803 = vmatmul.mubr.f32.gmra.mrb[36].mxu0 %v972_v12 }
 0x6e5   :  { %1805 = vmatprep.mubr.msk.f32.mxu0 %vm2099_vm0, %v2098_v0 }
 0x6e6   :  { %v973_v16 = vmax.f32 %v936_v14, 0.0 }
 0x6e7   :  { %v940_v17 = vpop.f32.mrb[16].mxu1 }
 0x6e8   :  { %v941_v18 = vadd.f32 %v1263_v57, %v940_v17  ;;  %v1745_v19 = vpop.f32.mrb[17].mxu1  ;;  %1806 = vmatmul.mubr.f32.gmra.mrb[38].mxu0 %v973_v16 }
 0x6e9   :  { %1808 = vmatprep.mubr.msk.f32.mxu0 %vm2099_vm0, %v2098_v0 }
 0x6ea   :  { %v974_v20 = vmax.f32 %v941_v18, 0.0 }
 0x6eb   :  { %v945_v21 = vpop.f32.mrb[18].mxu1 }
 0x6ec   :  { %v946_v22 = vadd.f32 %v1263_v57, %v945_v21  ;;  %v1748_v23 = vpop.f32.mrb[19].mxu1  ;;  %1809 = vmatmul.mubr.f32.gmra.mrb[40].mxu0 %v974_v20 }
 0x6ed   :  { %1811 = vmatprep.mubr.msk.f32.mxu0 %vm2099_vm0, %v2098_v0 }
 0x6ee   :  { %v975_v24 = vmax.f32 %v946_v22, 0.0 }
 0x6ef   :  { %v950_v25 = vpop.f32.mrb[20].mxu1 }
 0x6f0   :  { %v951_v26 = vadd.f32 %v1263_v57, %v950_v25  ;;  %v1751_v27 = vpop.f32.mrb[21].mxu1  ;;  %1812 = vmatmul.mubr.f32.gmra.mrb[42].mxu0 %v975_v24 }
 0x6f1   :  { %1814 = vmatprep.mubr.msk.f32.mxu0 %vm2099_vm0, %v2098_v0 }
 0x6f2   :  { %v976_v28 = vmax.f32 %v951_v26, 0.0 }
 0x6f3   :  { %v955_v29 = vpop.f32.mrb[22].mxu1 }
 0x6f4   :  { %v956_v30 = vadd.f32 %v1263_v57, %v955_v29  ;;  %v1754_v31 = vpop.f32.mrb[23].mxu1  ;;  %1815 = vmatmul.mubr.f32.gmra.mrb[44].mxu0 %v976_v28 }
 0x6f5   :  { %1817 = vmatprep.mubr.msk.f32.mxu0 %vm2099_vm0, %v2098_v0 }
 0x6f6   :  { %v977_v3 = vmax.f32 %v956_v30, 0.0 }
 0x6f7   :  { %v960_v32 = vpop.f32.mrb[24].mxu1 }
 0x6f8   :  { %v961_v33 = vadd.f32 %v1263_v57, %v960_v32  ;;  %v1757_v34 = vpop.f32.mrb[25].mxu1  ;;  %1818 = vmatmul.mubr.f32.gmra.mrb[46].mxu0 %v977_v3 }
 0x6fa   :  { %v978_v35 = vmax.f32 %v961_v33, 0.0 }
 0x6fb   :  { %v965_v36 = vpop.f32.mrb[26].mxu1 }
 0x6fc   :  { %v966_v37 = vadd.f32 %v1263_v57, %v965_v36  ;;  %v1760_v38 = vpop.f32.mrb[27].mxu1  ;;  %1821 = vmatmul.mubr.f32.vlgmr.msra.gmra.mrb[28].mxu1 %v978_v35 }
 0x6fd   :  { %1823 = vmatprep.mubr.msk.f32.mxu1 %vm2099_vm0, %v2098_v0 }
 0x6fe   :  { %v979_v39 = vmax.f32 %v966_v37, 0.0 }
 0x700   :  { %1824 = vmatmul.mubr.f32.gmra.mrb[30].mxu1 %v979_v39 }
 0x7ab   :  { %v1067_v41 = vpop.f32.mrb[30].mxu0 }
 0x7ac   :  { %v2312_v42 = vadd.f32 %v2309_v40, %v1067_v41  ;;  %v1795_v43 = vpop.f32.mrb[31].mxu0 }
 0x7ae   :  { %v1132_v44 = vmin.f32 %v2312_v42, 0.0  ;;  %vm1121_vm3 = vcmp.gt.f32.partialorder %v2312_v42, 0.0 }
 0x7af   :  { %v1072_v45 = vpop.f32.mrb[32].mxu0 }
 0x7b0   :  { %v1143_v46 = vmul.f32 1.442695, %v1132_v44  ;;  %v1073_v47 = vadd.f32 %v2309_v40, %v1072_v45  ;;  %v1798_v48 = vpop.f32.mrb[33].mxu0 }
 0x7b2   :  { %2042 = vpow2.f32 %v1143_v46  ;;  %v1133_v49 = vmin.f32 %v1073_v47, 0.0  ;;  %vm1122_vm4 = vcmp.gt.f32.partialorder %v1073_v47, 0.0 }
 0x7b3   :  { %v1077_v50 = vpop.f32.mrb[34].mxu0 }
 0x7b4   :  { %v1145_v0 = vmul.f32 1.442695, %v1133_v49  ;;  %v1078_v51 = vadd.f32 %v2309_v40, %v1077_v50  ;;  %v1801_v1 = vpop.f32.mrb[35].mxu0 }
 0x7b6   :  { %2044 = vpow2.f32 %v1145_v0  ;;  %v1134_v52 = vmin.f32 %v1078_v51, 0.0  ;;  %vm1123_vm5 = vcmp.gt.f32.partialorder %v1078_v51, 0.0 }
 0x7b7   :  { %v1082_v53 = vpop.f32.mrb[36].mxu0 }
 0x7b8   :  { %v1147_v54 = vmul.f32 1.442695, %v1134_v52  ;;  %v1083_v55 = vadd.f32 %v2309_v40, %v1082_v53  ;;  %v1804_v56 = vpop.f32.mrb[37].mxu0 }
 0x7ba   :  { %2046 = vpow2.f32 %v1147_v54  ;;  %v1135_v57 = vmin.f32 %v1083_v55, 0.0  ;;  %vm1124_vm6 = vcmp.gt.f32.partialorder %v1083_v55, 0.0 }
 0x7bb   :  { %v1087_v58 = vpop.f32.mrb[38].mxu0 }
 0x7bc   :  { %v2043_v59 = vpop.eup %2042  ;;  %v1149_v60 = vmul.f32 1.442695, %v1135_v57  ;;  %v1088_v61 = vadd.f32 %v2309_v40, %v1087_v58  ;;  %v1807_v62 = vpop.f32.mrb[39].mxu0 }
 0x7bd   :  { %v1265_v63 = vadd.f32 -1.0, %v2043_v59 }
 0x7be   :  { %2048 = vpow2.f32 %v1149_v60  ;;  %v1136_v2 = vmin.f32 %v1088_v61, 0.0  ;;  %vm1125_vm7 = vcmp.gt.f32.partialorder %v1088_v61, 0.0 }
 0x7bf   :  { %v1092_v4 = vpop.f32.mrb[40].mxu0  ;;  %v1176_v10 = vsel %vm1121_vm3, %v2312_v42, %v1265_v63 }
 0x7c0   :  { %v2045_v5 = vpop.eup %2044  ;;  %v1151_v6 = vmul.f32 1.442695, %v1136_v2  ;;  %v1093_v7 = vadd.f32 %v2309_v40, %v1092_v4  ;;  %v1810_v8 = vpop.f32.mrb[41].mxu0  ;;  %v1187_v15 = vadd.f32 1.0, %v1176_v10 }
 0x7c1   :  { %v1266_v9 = vadd.f32 -1.0, %v2045_v5 }
 0x7c2   :  { %2050 = vpow2.f32 %v1151_v6  ;;  %v1137_v11 = vmin.f32 %v1093_v7, 0.0  ;;  %v1198_v26 = vmul.f32 0.0045454544, %v1187_v15  ;;  %vm1126_vm8 = vcmp.gt.f32.partialorder %v1093_v7, 0.0 }
 0x7c3   :  { %v1177_v12 = vsel %vm1122_vm4, %v1073_v47, %v1266_v9  ;;  %v1097_v13 = vpop.f32.mrb[42].mxu0 }
 0x7c4   :  { %v2047_v14 = vpop.eup %2046  ;;  %v1188_v16 = vadd.f32 1.0, %v1177_v12  ;;  %v1153_v17 = vmul.f32 1.442695, %v1137_v11  ;;  %v1098_v18 = vadd.f32 %v2309_v40, %v1097_v13  ;;  %v1813_v19 = vpop.f32.mrb[43].mxu0 }
 0x7c5   :  { %v1267_v20 = vadd.f32 -1.0, %v2047_v14 }
 0x7c6   :  { %v1199_v21 = vmul.f32 0.04829963, %v1188_v16  ;;  %2052 = vpow2.f32 %v1153_v17  ;;  %v1138_v22 = vmin.f32 %v1098_v18, 0.0  ;;  %vm1127_vm9 = vcmp.gt.f32.partialorder %v1098_v18, 0.0 }
 0x7c7   :  { %v1178_v23 = vsel %vm1123_vm5, %v1078_v51, %v1267_v20  ;;  %v1102_v24 = vpop.f32.mrb[44].mxu0 }
 0x7c8   :  { %v2049_v25 = vpop.eup %2048  ;;  %v1189_v27 = vadd.f32 1.0, %v1178_v23  ;;  %v1155_v28 = vmul.f32 1.442695, %v1138_v22  ;;  %v1103_v29 = vadd.f32 %v2309_v40, %v1102_v24  ;;  %v1816_v30 = vpop.f32.mrb[45].mxu0  ;;  %v1200_v3 = vadd.f32 %v1199_v21, %v1198_v26 }
 0x7c9   :  { %v1268_v31 = vadd.f32 -1.0, %v2049_v25 }
 0x7ca   :  { %v1201_v32 = vmul.f32 0.09180751, %v1189_v27  ;;  %2054 = vpow2.f32 %v1155_v28  ;;  %v1139_v33 = vmin.f32 %v1103_v29, 0.0  ;;  %vm1128_vm10 = vcmp.gt.f32.partialorder %v1103_v29, 0.0 }
 0x7cb   :  { %v1179_v34 = vsel %vm1124_vm6, %v1083_v55, %v1268_v31  ;;  %v1107_v35 = vpop.f32.mrb[46].mxu0 }
 0x7cc   :  { %v2051_v36 = vpop.eup %2050  ;;  %v1202_v37 = vadd.f32 %v1201_v32, %v1200_v3  ;;  %v1190_v38 = vadd.f32 1.0, %v1179_v34  ;;  %v1157_v39 = vmul.f32 1.442695, %v1139_v33  ;;  %v1108_v41 = vadd.f32 %v2309_v40, %v1107_v35  ;;  %v1819_v43 = vpop.f32.mrb[47].mxu0  ;;  %v2070_v34 = vld [vmem:[%s2337_s0] sm:$0xff] }
 0x7cd   :  { %v1269_v44 = vadd.f32 -1.0, %v2051_v36  ;;  %v1220_v36 = vmul.f32 1.442695, %v2312_v42 }
 0x7ce   :  { %v1203_v45 = vmul.f32 0.12780426, %v1190_v38  ;;  %2056 = vpow2.f32 %v1157_v39  ;;  %v1140_v46 = vmin.f32 %v1108_v41, 0.0  ;;  %vm1129_vm11 = vcmp.gt.f32.partialorder %v1108_v41, 0.0 }
 0x7cf   :  { %v1180_v47 = vsel %vm1125_vm7, %v1088_v61, %v1269_v44  ;;  %v1112_v48 = vpop.f32.mrb[28].mxu1 }
 0x7d0   :  { %v2053_v49 = vpop.eup %2052  ;;  %v1204_v50 = vadd.f32 %v1203_v45, %v1202_v37  ;;  %v1191_v0 = vadd.f32 1.0, %v1180_v47  ;;  %v1159_v51 = vmul.f32 1.442695, %v1140_v46  ;;  %v1113_v1 = vadd.f32 %v2309_v40, %v1112_v48  ;;  %v1822_v52 = vpop.f32.mrb[29].mxu1 }
 0x7d1   :  { %v1270_v53 = vadd.f32 -1.0, %v2053_v49 }
 0x7d2   :  { %v1205_v54 = vmul.f32 0.14859654, %v1191_v0  ;;  %2058 = vpow2.f32 %v1159_v51  ;;  %v1141_v55 = vmin.f32 %v1113_v1, 0.0  ;;  %vm1130_vm12 = vcmp.gt.f32.partialorder %v1113_v1, 0.0 }
 0x7d3   :  { %v1181_v56 = vsel %vm1126_vm8, %v1093_v7, %v1270_v53  ;;  %v1117_v57 = vpop.f32.mrb[30].mxu1 }
 0x7d4   :  { %v2055_v58 = vpop.eup %2054  ;;  %v1206_v59 = vadd.f32 %v1205_v54, %v1204_v50  ;;  %v1192_v60 = vadd.f32 1.0, %v1181_v56  ;;  %v1161_v62 = vmul.f32 1.442695, %v1141_v55  ;;  %v1118_v61 = vadd.f32 %v2309_v40, %v1117_v57  ;;  %v1825_v63 = vpop.f32.mrb[31].mxu1 }
 0x7d5   :  { %v1271_v2 = vadd.f32 -1.0, %v2055_v58 }
 0x7d6   :  { %v1207_v4 = vmul.f32 0.15789321, %v1192_v60  ;;  %2060 = vpow2.f32 %v1161_v62  ;;  %v1142_v5 = vmin.f32 %v1118_v61, 0.0  ;;  %vm1131_vm13 = vcmp.gt.f32.partialorder %v1118_v61, 0.0 }
 0x7d7   :  { %v1182_v6 = vsel %vm1127_vm9, %v1098_v18, %v1271_v2 }
 0x7d8   :  { %v2057_v8 = vpop.eup %2056  ;;  %v1208_v9 = vadd.f32 %v1207_v4, %v1206_v59  ;;  %v1193_v10 = vadd.f32 1.0, %v1182_v6  ;;  %v1163_v11 = vmul.f32 1.442695, %v1142_v5 }
 0x7d9   :  { %v1272_v12 = vadd.f32 -1.0, %v2057_v8 }
 0x7da   :  { %v1209_v7 = vmul.f32 0.14859654, %v1193_v10  ;;  %2062 = vpow2.f32 %v1163_v11 }
 0x7db   :  { %v1183_v13 = vsel %vm1128_vm10, %v1103_v29, %v1272_v12  ;;  %2064 = vpow2.f32 %v1220_v36 }
 0x7dc   :  { %v2059_v14 = vpop.eup %2058  ;;  %v1210_v15 = vadd.f32 %v1209_v7, %v1208_v9  ;;  %v1194_v16 = vadd.f32 1.0, %v1183_v13 }
 0x7dd   :  { %v1273_v40 = vadd.f32 -1.0, %v2059_v14 }
 0x7de   :  { %v1211_v17 = vmul.f32 0.12780426, %v1194_v16 }
 0x7df   :  { %v1184_v19 = vsel %vm1129_vm11, %v1108_v41, %v1273_v40 }
 0x7e0   :  { %v2061_v20 = vpop.eup %2060  ;;  %v1212_v21 = vadd.f32 %v1211_v17, %v1210_v15  ;;  %v1195_v22 = vadd.f32 1.0, %v1184_v19 }
 0x7e1   :  { %v1274_v18 = vadd.f32 -1.0, %v2061_v20 }
 0x7e2   :  { %v1213_v23 = vmul.f32 0.09180751, %v1195_v22 }
 0x7e3   :  { %v1185_v24 = vsel %vm1130_vm12, %v1113_v1, %v1274_v18 }
 0x7e4   :  { %v2063_v25 = vpop.eup %2062  ;;  %v1196_v26 = vadd.f32 1.0, %v1185_v24  ;;  %v1214_v27 = vadd.f32 %v1213_v23, %v1212_v21 }
 0x7e5   :  { %v1275_v28 = vadd.f32 -1.0, %v2063_v25  ;;  %v2065_v38 = vpop.eup %2064 }
 0x7e6   :  { %v1215_v30 = vmul.f32 0.04829963, %v1196_v26 }
 0x7e7   :  { %v1186_v29 = vsel %vm1131_vm13, %v1118_v61, %v1275_v28 }
 0x7e8   :  { %v1197_v31 = vadd.f32 1.0, %v1186_v29  ;;  %v1216_v3 = vadd.f32 %v1215_v30, %v1214_v27 }
 0x7ea   :  { %v1217_v32 = vmul.f32 0.0045454544, %v1197_v31 }
 0x7ec   :  { %v1218_v33 = vadd.f32 %v1217_v32, %v1216_v3 }
 0x7ee   :  { %v1219_v35 = vmul.f32 %v2070_v34, %v1218_v33 }
 0x7f0   :  { %1223 = vrot.lane.b32.xlu0 %v1219_v35, %s2097_s20 }
 0x7f4   :  { %1228 = vrot.lane.b32.xlu0 %v2312_v42, %s2101_s26 }
 0x862   :  { %v1224_v37 = vpop.permute.xlu0 %1223 }
 0x863   :  { %v1226_v39 = vmul.f32 %v2065_v38, %v1224_v37 }
 0x866   :  { %v1229_v41 = vpop.permute.xlu0 %1228 }
 0x867   :  { %v1231_v43 = vadd.f32 %v1229_v41, %v1226_v39 }
 0x869   :  { %1233 = vrot.lane.b32.xlu1 %v1231_v43, %s2102_s27 }
 0x8db   :  { %v1234_v44 = vpop.permute.xlu1 %1233 }
 0x8dc   :  { %v1236_v45 = vsel %vm32_vm2, %v1234_v44, 0.0 }
 0x8dd   :  { %1237 = vadd.xlane.f32.xlu1 %v1236_v45 }
 0x96a   :  { %v1238_v46 = vpop.xlane.xlu1 %1237 }
 0x96b   :  { %v1239_v47 = vsub.f32 0.0, %v1238_v46 }
 0x96d   :  { %v1240_v48 = vmul.f32 1.442695, %v1239_v47 }
 0x96f   :  { %2066 = vpow2.f32 %v1240_v48 }
 0x979   :  { %v2067_v49 = vpop.eup %2066 }
 0x97a   :  { %v1242_v50 = vadd.f32 1.0, %v2067_v49 }
 0x97c   :  { %2068 = vrcp.f32 %v1242_v50 }
 0x986   :  { %v2069_v42 = vpop.eup %2068 }
 0x987   :  { %1246 = vst.msk [vmem:[%s2339_s2] sm:$0xff] %vm1245_vm14, %v2069_v42 }
 0x988   :  { %1251 = vsyncpa [#allocation3], 1 }

</bundles_post_ra>
